<compile_context>
chip_gen: v5e
topology: v5e:2x2
jax: 0.10.0
libtpu: 0.0.40
codegen_flags: <defaults>
</compile_context>

<pallas_src>
import functools

import jax
import jax.numpy as jnp
from jax.experimental import pallas as pl
from jax.experimental.pallas import tpu as pltpu

_ROW = 16     # bf16 sublane packing: one bf16 vreg holds [16, 128]
_LANE = 128   # lane width


def _round_up(x, m):
    return ((x + m - 1) // m) * m


# --------------------------------------------------------------------------
# Kernel
# --------------------------------------------------------------------------
def actor_kernel(x_ref,
                 w1_ref, b1_ref,
                 w2_ref, b2_ref,
                 w3_ref, b3_ref,
                 w4_ref, b4_ref,
                 w5_ref, b5_ref,
                 out_ref,
                 *, max_action):
    """Fused MLP forward: 4 x (Linear + ReLU) -> Linear -> sigmoid * max_action.

    x and weights arrive as bf16; biases are f32 (1, out); all matmuls
    accumulate in f32 on the MXU (preferred_element_type). The activation `h`
    stays VMEM/vreg resident between layers — no HBM round-trips in the body.
    """
    h = x_ref[...]  # already bf16 (cast in the wrapper)

    h = jnp.dot(h, w1_ref[...], preferred_element_type=jnp.float32) + b1_ref[...]
    h = jnp.maximum(h, 0.0).astype(jnp.bfloat16)

    h = jnp.dot(h, w2_ref[...], preferred_element_type=jnp.float32) + b2_ref[...]
    h = jnp.maximum(h, 0.0).astype(jnp.bfloat16)

    h = jnp.dot(h, w3_ref[...], preferred_element_type=jnp.float32) + b3_ref[...]
    h = jnp.maximum(h, 0.0).astype(jnp.bfloat16)

    h = jnp.dot(h, w4_ref[...], preferred_element_type=jnp.float32) + b4_ref[...]
    h = jnp.maximum(h, 0.0).astype(jnp.bfloat16)

    logits = jnp.dot(h, w5_ref[...], preferred_element_type=jnp.float32) + b5_ref[...]

    # sigmoid(x) = 1 / (1 + exp(-x)); exp and approx-reciprocal both go to the
    # EUP slot — effectively free next to the store epilogue.
    sig = pl.reciprocal(1.0 + jnp.exp(-logits), approx=True)
    out_ref[...] = (max_action * sig).astype(out_ref.dtype)


# --------------------------------------------------------------------------
# One-time parameter preparation (hoisted out of the per-call hot path)
# --------------------------------------------------------------------------
def prepare_actor_params(params):
    """Convert f32 master params once: bf16 weights (in, out), f32 biases
    (1, out), head padded to a lane-dense multiple of 128. Call this ONCE and
    reuse the result for every forward pass."""
    action_dim = int(params["w5"].shape[1])
    action_pad = _round_up(max(action_dim, _LANE), _LANE)
    prep = {"action_dim": action_dim}
    for i in range(1, 6):
        w = params[f"w{i}"].astype(jnp.bfloat16)
        b = params[f"b{i}"].astype(jnp.float32).reshape(1, -1)
        if i == 5 and action_pad != action_dim:
            w = jnp.pad(w, ((0, 0), (0, action_pad - action_dim)))
            b = jnp.pad(b, ((0, 0), (0, action_pad - action_dim)))
        prep[f"w{i}"] = w
        prep[f"b{i}"] = b
    return jax.tree_util.tree_map(
        lambda a: a if not isinstance(a, jnp.ndarray) else a, prep)


def _choose_tiles(batch, tile_m):
    """Pick (tile_rows, num_tiles) for the batch axis."""
    if batch <= 2 * _ROW:
        # Tiny inference batch: one tile, rows padded to bf16 sublane packing.
        return _round_up(max(batch, _ROW), _ROW), 1
    if batch <= 2 * tile_m:
        # Two tiles so the "parallel" batch axis shards across both
        # TensorCores on v7x (harmless single-core loop on v5e/v6e).
        return _round_up(pl.cdiv(batch, 2), _ROW), 2
    tm = _round_up(tile_m, _ROW)
    return tm, pl.cdiv(batch, tm)


# --------------------------------------------------------------------------
# Forward wrapper
# --------------------------------------------------------------------------
def actor_forward(state, prep, max_action, *, tile_m=512):
    """Fused Actor forward.

    state: (B, state_dim) f32 (or bf16)
    prep:  output of prepare_actor_params (bf16 weights, f32 biases, padded head)
    """
    batch, state_dim = state.shape
    hidden = prep["w1"].shape[1]
    action_dim = prep["action_dim"]
    action_pad = prep["w5"].shape[1]

    tm, num_tiles = _choose_tiles(batch, tile_m)
    b_pad = tm * num_tiles

    # bf16 state: halves the x DMA and removes a per-tile convert.
    x = state.astype(jnp.bfloat16)
    if b_pad != batch:
        x = jnp.pad(x, ((0, b_pad - batch), (0, 0)))

    weights_biases = (prep["w1"], prep["b1"], prep["w2"], prep["b2"],
                      prep["w3"], prep["b3"], prep["w4"], prep["b4"],
                      prep["w5"], prep["b5"])

    x_spec = pl.BlockSpec((tm, state_dim), lambda i: (i, 0))
    out_spec = pl.BlockSpec((tm, action_pad), lambda i: (i, 0))

    def make_in_specs(single_buffer_weights):
        def resident(arr):
            # Full-array block, same block index every grid step -> DMA'd once,
            # VMEM-resident across batch tiles. Buffered(1): no second copy.
            if single_buffer_weights:
                return pl.BlockSpec(arr.shape, lambda i: (0, 0),
                                    pipeline_mode=pl.Buffered(1))
            return pl.BlockSpec(arr.shape, lambda i: (0, 0))
        return [x_spec] + [resident(a) for a in weights_biases]

    flops = 2 * b_pad * (state_dim * hidden + 3 * hidden * hidden
                         + hidden * action_pad)
    bytes_accessed = (int(x.size) * 2
                      + sum(int(prep[f"w{i}"].size) * 2 for i in range(1, 6))
                      + sum(int(prep[f"b{i}"].size) * 4 for i in range(1, 6))
                      + b_pad * action_pad * 2)
    cost = pl.CostEstimate(flops=int(flops),
                           transcendentals=int(b_pad * action_pad),
                           bytes_accessed=int(bytes_accessed))

    kernel = functools.partial(actor_kernel, max_action=float(max_action))

    def run(in_specs):
        return pl.pallas_call(
            kernel,
            # bf16 padded slab: halves the lane-padded writeback.
            out_shape=jax.ShapeDtypeStruct((b_pad, action_pad), jnp.bfloat16),
            grid=(num_tiles,),
            in_specs=in_specs,
            out_specs=out_spec,
            compiler_params=pltpu.CompilerParams(
                dimension_semantics=("parallel",),
            ),
            cost_estimate=cost,
        )(x, *weights_biases)

    try:
        out = run(make_in_specs(True))
    except Exception:
        # Fallback for JAX versions that reject single-buffered pipeline_mode.
        out = run(make_in_specs(False))

    return out[:batch, :action_dim].astype(jnp.float32)


# --------------------------------------------------------------------------
# Init + pure-JAX reference
# --------------------------------------------------------------------------
def init_actor_params(key, state_dim, action_dim, hidden=256):
    """PyTorch nn.Linear-style init: U[-1/sqrt(fan_in), 1/sqrt(fan_in)].
    Weights stored as (in, out) == PyTorch weight.T. Masters stay f32."""
    dims = [(state_dim, hidden), (hidden, hidden), (hidden, hidden),
            (hidden, hidden), (hidden, action_dim)]
    params = {}
    for i, (fan_in, fan_out) in enumerate(dims, start=1):
        key, kw, kb = jax.random.split(key, 3)
        bound = 1.0 / jnp.sqrt(float(fan_in))
        params[f"w{i}"] = jax.random.uniform(
            kw, (fan_in, fan_out), dtype=jnp.float32, minval=-bound, maxval=bound)
        params[f"b{i}"] = jax.random.uniform(
            kb, (1, fan_out), dtype=jnp.float32, minval=-bound, maxval=bound)
    return params


def actor_forward_ref(state, params, max_action):
    """Pure-JAX f32 reference for correctness checking."""
    h = state
    for i in range(1, 5):
        h = jnp.maximum(h @ params[f"w{i}"] + params[f"b{i}"], 0.0)
    logits = h @ params["w5"] + params["b5"]
    return max_action * jax.nn.sigmoid(logits)


if __name__ == "__main__":
    key = jax.random.PRNGKey(0)

    state_dim = 16
    action_dim = 8
    max_action = 2.0

    key, k_params = jax.random.split(key)
    params = init_actor_params(k_params, state_dim, action_dim)
    prep = prepare_actor_params(params)   # one-time conversion (bf16 + padded head)

    # bf16 weights/activations/output vs f32 reference -> loosened tolerance
    # (outputs lie in [0, max_action] = [0, 2]).
    ATOL = 6e-2

    # Case 1: tiny inference batch (single 16-row padded tile).
    key, k_state = jax.random.split(key)
    state_small = jax.random.normal(k_state, (2, state_dim), dtype=jnp.float32)
    out_small = jax.block_until_ready(actor_forward(state_small, prep, max_action))
    ref_small = actor_forward_ref(state_small, params, max_action)
    assert out_small.shape == (2, action_dim)
    assert jnp.allclose(out_small, ref_small, atol=ATOL), "small-batch mismatch vs JAX reference"
    assert bool(jnp.all(out_small >= -1e-3)) and bool(jnp.all(out_small <= max_action + 1e-2))

    # Case 2: training-size batch -> two 112-row tiles ("parallel" axis uses
    # both TensorCores on v7x).
    key, k_state2 = jax.random.split(key)
    state_big = jax.random.normal(k_state2, (200, state_dim), dtype=jnp.float32)
    out_big = jax.block_until_ready(actor_forward(state_big, prep, max_action))
    ref_big = actor_forward_ref(state_big, params, max_action)
    assert out_big.shape == (200, action_dim)
    assert jnp.allclose(out_big, ref_big, atol=ATOL), "big-batch mismatch vs JAX reference"
    assert bool(jnp.all(out_big >= -1e-3)) and bool(jnp.all(out_big <= max_action + 1e-2))

    # Case 3: large batch exercising 512-row tiles.
    key, k_state3 = jax.random.split(key)
    state_huge = jax.random.normal(k_state3, (1200, state_dim), dtype=jnp.float32)
    out_huge = jax.block_until_ready(actor_forward(state_huge, prep, max_action))
    ref_huge = actor_forward_ref(state_huge, params, max_action)
    assert out_huge.shape == (1200, action_dim)
    assert jnp.allclose(out_huge, ref_huge, atol=ATOL), "huge-batch mismatch vs JAX reference"

    print("KERNEL_OK")
</pallas_src>

<mosaic_0001>
module attributes {stable_mosaic.version = 11 : i64} {
  func.func @actor_kernel(%arg0: i32, %arg1: memref<16x16xbf16, #tpu.memory_space<vmem>>, %arg2: memref<16x256xbf16, #tpu.memory_space<vmem>>, %arg3: memref<1x256xf32, #tpu.memory_space<vmem>>, %arg4: memref<256x256xbf16, #tpu.memory_space<vmem>>, %arg5: memref<1x256xf32, #tpu.memory_space<vmem>>, %arg6: memref<256x256xbf16, #tpu.memory_space<vmem>>, %arg7: memref<1x256xf32, #tpu.memory_space<vmem>>, %arg8: memref<256x256xbf16, #tpu.memory_space<vmem>>, %arg9: memref<1x256xf32, #tpu.memory_space<vmem>>, %arg10: memref<256x128xbf16, #tpu.memory_space<vmem>>, %arg11: memref<1x128xf32, #tpu.memory_space<vmem>>, %arg12: memref<16x128xbf16, #tpu.memory_space<vmem>>) attributes {dimension_semantics = [#tpu.dimension_semantics<parallel>], iteration_bounds = array<i64: 1>, scalar_prefetch = 0 : i64, scratch_operands = 0 : i64, tpu.core_type = #tpu.core_type<tc>, window_params = [{transform_indices = @transform_0, window_bounds = array<i64: 16, 16>}, {pipeline_mode = #tpu.pipeline_mode<synchronous>, transform_indices = @transform_1, window_bounds = array<i64: 16, 256>}, {pipeline_mode = #tpu.pipeline_mode<synchronous>, transform_indices = @transform_2, window_bounds = array<i64: 1, 256>}, {pipeline_mode = #tpu.pipeline_mode<synchronous>, transform_indices = @transform_3, window_bounds = array<i64: 256, 256>}, {pipeline_mode = #tpu.pipeline_mode<synchronous>, transform_indices = @transform_4, window_bounds = array<i64: 1, 256>}, {pipeline_mode = #tpu.pipeline_mode<synchronous>, transform_indices = @transform_5, window_bounds = array<i64: 256, 256>}, {pipeline_mode = #tpu.pipeline_mode<synchronous>, transform_indices = @transform_6, window_bounds = array<i64: 1, 256>}, {pipeline_mode = #tpu.pipeline_mode<synchronous>, transform_indices = @transform_7, window_bounds = array<i64: 256, 256>}, {pipeline_mode = #tpu.pipeline_mode<synchronous>, transform_indices = @transform_8, window_bounds = array<i64: 1, 256>}, {pipeline_mode = #tpu.pipeline_mode<synchronous>, transform_indices = @transform_9, window_bounds = array<i64: 256, 128>}, {pipeline_mode = #tpu.pipeline_mode<synchronous>, transform_indices = @transform_10, window_bounds = array<i64: 1, 128>}, {transform_indices = @transform_11, window_bounds = array<i64: 16, 128>}]} {
    %c0 = arith.constant 0 : index
    %c0_0 = arith.constant 0 : index
    %0 = vector.load %arg1[%c0, %c0_0] : memref<16x16xbf16, #tpu.memory_space<vmem>>, vector<16x16xbf16>
    %c0_1 = arith.constant 0 : index
    %c0_2 = arith.constant 0 : index
    %1 = vector.load %arg2[%c0_1, %c0_2] : memref<16x256xbf16, #tpu.memory_space<vmem>>, vector<16x256xbf16>
    %cst = arith.constant dense<0.000000e+00> : vector<16x256xf32>
    %2 = tpu.matmul %0, %1, %cst {dimension_numbers = #tpu.dot_dimension_numbers<[1], [0], [0], [1], [0, 0, 1, 1], [], []>} : vector<16x16xbf16>, vector<16x256xbf16>, vector<16x256xf32> -> vector<16x256xf32>
    %c0_3 = arith.constant 0 : index
    %c0_4 = arith.constant 0 : index
    %3 = vector.load %arg3[%c0_3, %c0_4] : memref<1x256xf32, #tpu.memory_space<vmem>>, vector<1x256xf32>
    %4 = vector.broadcast %3 : vector<1x256xf32> to vector<16x256xf32>
    %5 = arith.addf %2, %4 : vector<16x256xf32>
    %cst_5 = arith.constant 0.000000e+00 : f32
    %6 = vector.broadcast %cst_5 : f32 to vector<16x256xf32>
    %7 = arith.maximumf %5, %6 : vector<16x256xf32>
    %8 = arith.truncf %7 : vector<16x256xf32> to vector<16x256xbf16>
    %c0_6 = arith.constant 0 : index
    %c0_7 = arith.constant 0 : index
    %9 = vector.load %arg4[%c0_6, %c0_7] : memref<256x256xbf16, #tpu.memory_space<vmem>>, vector<256x256xbf16>
    %cst_8 = arith.constant dense<0.000000e+00> : vector<16x256xf32>
    %10 = tpu.matmul %8, %9, %cst_8 {dimension_numbers = #tpu.dot_dimension_numbers<[1], [0], [0], [1], [0, 0, 1, 1], [], []>} : vector<16x256xbf16>, vector<256x256xbf16>, vector<16x256xf32> -> vector<16x256xf32>
    %c0_9 = arith.constant 0 : index
    %c0_10 = arith.constant 0 : index
    %11 = vector.load %arg5[%c0_9, %c0_10] : memref<1x256xf32, #tpu.memory_space<vmem>>, vector<1x256xf32>
    %12 = vector.broadcast %11 : vector<1x256xf32> to vector<16x256xf32>
    %13 = arith.addf %10, %12 : vector<16x256xf32>
    %cst_11 = arith.constant 0.000000e+00 : f32
    %14 = vector.broadcast %cst_11 : f32 to vector<16x256xf32>
    %15 = arith.maximumf %13, %14 : vector<16x256xf32>
    %16 = arith.truncf %15 : vector<16x256xf32> to vector<16x256xbf16>
    %c0_12 = arith.constant 0 : index
    %c0_13 = arith.constant 0 : index
    %17 = vector.load %arg6[%c0_12, %c0_13] : memref<256x256xbf16, #tpu.memory_space<vmem>>, vector<256x256xbf16>
    %cst_14 = arith.constant dense<0.000000e+00> : vector<16x256xf32>
    %18 = tpu.matmul %16, %17, %cst_14 {dimension_numbers = #tpu.dot_dimension_numbers<[1], [0], [0], [1], [0, 0, 1, 1], [], []>} : vector<16x256xbf16>, vector<256x256xbf16>, vector<16x256xf32> -> vector<16x256xf32>
    %c0_15 = arith.constant 0 : index
    %c0_16 = arith.constant 0 : index
    %19 = vector.load %arg7[%c0_15, %c0_16] : memref<1x256xf32, #tpu.memory_space<vmem>>, vector<1x256xf32>
    %20 = vector.broadcast %19 : vector<1x256xf32> to vector<16x256xf32>
    %21 = arith.addf %18, %20 : vector<16x256xf32>
    %cst_17 = arith.constant 0.000000e+00 : f32
    %22 = vector.broadcast %cst_17 : f32 to vector<16x256xf32>
    %23 = arith.maximumf %21, %22 : vector<16x256xf32>
    %24 = arith.truncf %23 : vector<16x256xf32> to vector<16x256xbf16>
    %c0_18 = arith.constant 0 : index
    %c0_19 = arith.constant 0 : index
    %25 = vector.load %arg8[%c0_18, %c0_19] : memref<256x256xbf16, #tpu.memory_space<vmem>>, vector<256x256xbf16>
    %cst_20 = arith.constant dense<0.000000e+00> : vector<16x256xf32>
    %26 = tpu.matmul %24, %25, %cst_20 {dimension_numbers = #tpu.dot_dimension_numbers<[1], [0], [0], [1], [0, 0, 1, 1], [], []>} : vector<16x256xbf16>, vector<256x256xbf16>, vector<16x256xf32> -> vector<16x256xf32>
    %c0_21 = arith.constant 0 : index
    %c0_22 = arith.constant 0 : index
    %27 = vector.load %arg9[%c0_21, %c0_22] : memref<1x256xf32, #tpu.memory_space<vmem>>, vector<1x256xf32>
    %28 = vector.broadcast %27 : vector<1x256xf32> to vector<16x256xf32>
    %29 = arith.addf %26, %28 : vector<16x256xf32>
    %cst_23 = arith.constant 0.000000e+00 : f32
    %30 = vector.broadcast %cst_23 : f32 to vector<16x256xf32>
    %31 = arith.maximumf %29, %30 : vector<16x256xf32>
    %32 = arith.truncf %31 : vector<16x256xf32> to vector<16x256xbf16>
    %c0_24 = arith.constant 0 : index
    %c0_25 = arith.constant 0 : index
    %33 = vector.load %arg10[%c0_24, %c0_25] : memref<256x128xbf16, #tpu.memory_space<vmem>>, vector<256x128xbf16>
    %cst_26 = arith.constant dense<0.000000e+00> : vector<16x128xf32>
    %34 = tpu.matmul %32, %33, %cst_26 {dimension_numbers = #tpu.dot_dimension_numbers<[1], [0], [0], [1], [0, 0, 1, 1], [], []>} : vector<16x256xbf16>, vector<256x128xbf16>, vector<16x128xf32> -> vector<16x128xf32>
    %c0_27 = arith.constant 0 : index
    %c0_28 = arith.constant 0 : index
    %35 = vector.load %arg11[%c0_27, %c0_28] : memref<1x128xf32, #tpu.memory_space<vmem>>, vector<1x128xf32>
    %36 = vector.broadcast %35 : vector<1x128xf32> to vector<16x128xf32>
    %37 = arith.addf %34, %36 : vector<16x128xf32>
    %cst_29 = arith.constant 0.000000e+00 : f32
    %38 = vector.broadcast %cst_29 : f32 to vector<16x128xf32>
    %39 = arith.subf %38, %37 : vector<16x128xf32>
    %40 = math.exp %39 : vector<16x128xf32>
    %cst_30 = arith.constant 1.000000e+00 : f32
    %41 = vector.broadcast %cst_30 : f32 to vector<16x128xf32>
    %42 = arith.addf %41, %40 : vector<16x128xf32>
    %43 = tpu.reciprocal %42 {approx = true} : vector<16x128xf32> -> vector<16x128xf32>
    %cst_31 = arith.constant 2.000000e+00 : f32
    %44 = vector.broadcast %cst_31 : f32 to vector<16x128xf32>
    %45 = arith.mulf %44, %43 : vector<16x128xf32>
    %46 = arith.truncf %45 : vector<16x128xf32> to vector<16x128xbf16>
    %c0_32 = arith.constant 0 : index
    %c0_33 = arith.constant 0 : index
    %47 = vector.load %arg12[%c0_32, %c0_33] : memref<16x128xbf16, #tpu.memory_space<vmem>>, vector<16x128xbf16>
    tpu.vector_store %arg12[%c0_32, %c0_33], %46 {strides = array<i32>} : memref<16x128xbf16, #tpu.memory_space<vmem>>, vector<16x128xbf16>,
    return
  }
  func.func @transform_0(%arg0: i32) -> (i32, i32) {
    %c0_i32 = arith.constant 0 : i32
    %c0_i32_0 = arith.constant 0 : i32
    return %arg0, %c0_i32 : i32, i32
  }
  func.func @transform_1(%arg0: i32) -> (i32, i32) {
    %c0_i32 = arith.constant 0 : i32
    %c0_i32_0 = arith.constant 0 : i32
    %c0_i32_1 = arith.constant 0 : i32
    return %c0_i32, %c0_i32_0 : i32, i32
  }
  func.func @transform_2(%arg0: i32) -> (i32, i32) {
    %c0_i32 = arith.constant 0 : i32
    %c0_i32_0 = arith.constant 0 : i32
    %c0_i32_1 = arith.constant 0 : i32
    return %c0_i32, %c0_i32_0 : i32, i32
  }
  func.func @transform_3(%arg0: i32) -> (i32, i32) {
    %c0_i32 = arith.constant 0 : i32
    %c0_i32_0 = arith.constant 0 : i32
    %c0_i32_1 = arith.constant 0 : i32
    return %c0_i32, %c0_i32_0 : i32, i32
  }
  func.func @transform_4(%arg0: i32) -> (i32, i32) {
    %c0_i32 = arith.constant 0 : i32
    %c0_i32_0 = arith.constant 0 : i32
    %c0_i32_1 = arith.constant 0 : i32
    return %c0_i32, %c0_i32_0 : i32, i32
  }
  func.func @transform_5(%arg0: i32) -> (i32, i32) {
    %c0_i32 = arith.constant 0 : i32
    %c0_i32_0 = arith.constant 0 : i32
    %c0_i32_1 = arith.constant 0 : i32
    return %c0_i32, %c0_i32_0 : i32, i32
  }
  func.func @transform_6(%arg0: i32) -> (i32, i32) {
    %c0_i32 = arith.constant 0 : i32
    %c0_i32_0 = arith.constant 0 : i32
    %c0_i32_1 = arith.constant 0 : i32
    return %c0_i32, %c0_i32_0 : i32, i32
  }
  func.func @transform_7(%arg0: i32) -> (i32, i32) {
    %c0_i32 = arith.constant 0 : i32
    %c0_i32_0 = arith.constant 0 : i32
    %c0_i32_1 = arith.constant 0 : i32
    return %c0_i32, %c0_i32_0 : i32, i32
  }
  func.func @transform_8(%arg0: i32) -> (i32, i32) {
    %c0_i32 = arith.constant 0 : i32
    %c0_i32_0 = arith.constant 0 : i32
    %c0_i32_1 = arith.constant 0 : i32
    return %c0_i32, %c0_i32_0 : i32, i32
  }
  func.func @transform_9(%arg0: i32) -> (i32, i32) {
    %c0_i32 = arith.constant 0 : i32
    %c0_i32_0 = arith.constant 0 : i32
    %c0_i32_1 = arith.constant 0 : i32
    return %c0_i32, %c0_i32_0 : i32, i32
  }
  func.func @transform_10(%arg0: i32) -> (i32, i32) {
    %c0_i32 = arith.constant 0 : i32
    %c0_i32_0 = arith.constant 0 : i32
    %c0_i32_1 = arith.constant 0 : i32
    return %c0_i32, %c0_i32_0 : i32, i32
  }
  func.func @transform_11(%arg0: i32) -> (i32, i32) {
    %c0_i32 = arith.constant 0 : i32
    %c0_i32_0 = arith.constant 0 : i32
    return %arg0, %c0_i32 : i32, i32
  }
}

module attributes {stable_mosaic.version = 11 : i64} {
  func.func @actor_kernel(%arg0: i32, %arg1: memref<16x16xbf16, #tpu.memory_space<vmem>>, %arg2: memref<16x256xbf16, #tpu.memory_space<vmem>>, %arg3: memref<1x256xf32, #tpu.memory_space<vmem>>, %arg4: memref<256x256xbf16, #tpu.memory_space<vmem>>, %arg5: memref<1x256xf32, #tpu.memory_space<vmem>>, %arg6: memref<256x256xbf16, #tpu.memory_space<vmem>>, %arg7: memref<1x256xf32, #tpu.memory_space<vmem>>, %arg8: memref<256x256xbf16, #tpu.memory_space<vmem>>, %arg9: memref<1x256xf32, #tpu.memory_space<vmem>>, %arg10: memref<256x128xbf16, #tpu.memory_space<vmem>>, %arg11: memref<1x128xf32, #tpu.memory_space<vmem>>, %arg12: memref<16x128xbf16, #tpu.memory_space<vmem>>) attributes {dimension_semantics = [#tpu.dimension_semantics<parallel>], iteration_bounds = array<i64: 1>, scalar_prefetch = 0 : i64, scratch_operands = 0 : i64, tpu.core_type = #tpu.core_type<tc>, window_params = [{transform_indices = @transform_0, window_bounds = array<i64: 16, 16>}, {pipeline_mode = #tpu.pipeline_mode<synchronous>, transform_indices = @transform_1, window_bounds = array<i64: 16, 256>}, {pipeline_mode = #tpu.pipeline_mode<synchronous>, transform_indices = @transform_2, window_bounds = array<i64: 1, 256>}, {pipeline_mode = #tpu.pipeline_mode<synchronous>, transform_indices = @transform_3, window_bounds = array<i64: 256, 256>}, {pipeline_mode = #tpu.pipeline_mode<synchronous>, transform_indices = @transform_4, window_bounds = array<i64: 1, 256>}, {pipeline_mode = #tpu.pipeline_mode<synchronous>, transform_indices = @transform_5, window_bounds = array<i64: 256, 256>}, {pipeline_mode = #tpu.pipeline_mode<synchronous>, transform_indices = @transform_6, window_bounds = array<i64: 1, 256>}, {pipeline_mode = #tpu.pipeline_mode<synchronous>, transform_indices = @transform_7, window_bounds = array<i64: 256, 256>}, {pipeline_mode = #tpu.pipeline_mode<synchronous>, transform_indices = @transform_8, window_bounds = array<i64: 1, 256>}, {pipeline_mode = #tpu.pipeline_mode<synchronous>, transform_indices = @transform_9, window_bounds = array<i64: 256, 128>}, {pipeline_mode = #tpu.pipeline_mode<synchronous>, transform_indices = @transform_10, window_bounds = array<i64: 1, 128>}, {transform_indices = @transform_11, window_bounds = array<i64: 16, 128>}]} {
    %c0 = arith.constant 0 : index
    %c0_0 = arith.constant 0 : index
    %0 = vector.load %arg1[%c0, %c0_0] : memref<16x16xbf16, #tpu.memory_space<vmem>>, vector<16x16xbf16>
    %c0_1 = arith.constant 0 : index
    %c0_2 = arith.constant 0 : index
    %1 = vector.load %arg2[%c0_1, %c0_2] : memref<16x256xbf16, #tpu.memory_space<vmem>>, vector<16x256xbf16>
    %cst = arith.constant dense<0.000000e+00> : vector<16x256xf32>
    %2 = tpu.matmul %0, %1, %cst {dimension_numbers = #tpu.dot_dimension_numbers<[1], [0], [0], [1], [0, 0, 1, 1], [], []>} : vector<16x16xbf16>, vector<16x256xbf16>, vector<16x256xf32> -> vector<16x256xf32>
    %c0_3 = arith.constant 0 : index
    %c0_4 = arith.constant 0 : index
    %3 = vector.load %arg3[%c0_3, %c0_4] : memref<1x256xf32, #tpu.memory_space<vmem>>, vector<1x256xf32>
    %4 = vector.broadcast %3 : vector<1x256xf32> to vector<16x256xf32>
    %5 = arith.addf %2, %4 : vector<16x256xf32>
    %cst_5 = arith.constant 0.000000e+00 : f32
    %6 = vector.broadcast %cst_5 : f32 to vector<16x256xf32>
    %7 = arith.maximumf %5, %6 : vector<16x256xf32>
    %8 = arith.truncf %7 : vector<16x256xf32> to vector<16x256xbf16>
    %c0_6 = arith.constant 0 : index
    %c0_7 = arith.constant 0 : index
    %9 = vector.load %arg4[%c0_6, %c0_7] : memref<256x256xbf16, #tpu.memory_space<vmem>>, vector<256x256xbf16>
    %cst_8 = arith.constant dense<0.000000e+00> : vector<16x256xf32>
    %10 = tpu.matmul %8, %9, %cst_8 {dimension_numbers = #tpu.dot_dimension_numbers<[1], [0], [0], [1], [0, 0, 1, 1], [], []>} : vector<16x256xbf16>, vector<256x256xbf16>, vector<16x256xf32> -> vector<16x256xf32>
    %c0_9 = arith.constant 0 : index
    %c0_10 = arith.constant 0 : index
    %11 = vector.load %arg5[%c0_9, %c0_10] : memref<1x256xf32, #tpu.memory_space<vmem>>, vector<1x256xf32>
    %12 = vector.broadcast %11 : vector<1x256xf32> to vector<16x256xf32>
    %13 = arith.addf %10, %12 : vector<16x256xf32>
    %cst_11 = arith.constant 0.000000e+00 : f32
    %14 = vector.broadcast %cst_11 : f32 to vector<16x256xf32>
    %15 = arith.maximumf %13, %14 : vector<16x256xf32>
    %16 = arith.truncf %15 : vector<16x256xf32> to vector<16x256xbf16>
    %c0_12 = arith.constant 0 : index
    %c0_13 = arith.constant 0 : index
    %17 = vector.load %arg6[%c0_12, %c0_13] : memref<256x256xbf16, #tpu.memory_space<vmem>>, vector<256x256xbf16>
    %cst_14 = arith.constant dense<0.000000e+00> : vector<16x256xf32>
    %18 = tpu.matmul %16, %17, %cst_14 {dimension_numbers = #tpu.dot_dimension_numbers<[1], [0], [0], [1], [0, 0, 1, 1], [], []>} : vector<16x256xbf16>, vector<256x256xbf16>, vector<16x256xf32> -> vector<16x256xf32>
    %c0_15 = arith.constant 0 : index
    %c0_16 = arith.constant 0 : index
    %19 = vector.load %arg7[%c0_15, %c0_16] : memref<1x256xf32, #tpu.memory_space<vmem>>, vector<1x256xf32>
    %20 = vector.broadcast %19 : vector<1x256xf32> to vector<16x256xf32>
    %21 = arith.addf %18, %20 : vector<16x256xf32>
    %cst_17 = arith.constant 0.000000e+00 : f32
    %22 = vector.broadcast %cst_17 : f32 to vector<16x256xf32>
    %23 = arith.maximumf %21, %22 : vector<16x256xf32>
    %24 = arith.truncf %23 : vector<16x256xf32> to vector<16x256xbf16>
    %c0_18 = arith.constant 0 : index
    %c0_19 = arith.constant 0 : index
    %25 = vector.load %arg8[%c0_18, %c0_19] : memref<256x256xbf16, #tpu.memory_space<vmem>>, vector<256x256xbf16>
    %cst_20 = arith.constant dense<0.000000e+00> : vector<16x256xf32>
    %26 = tpu.matmul %24, %25, %cst_20 {dimension_numbers = #tpu.dot_dimension_numbers<[1], [0], [0], [1], [0, 0, 1, 1], [], []>} : vector<16x256xbf16>, vector<256x256xbf16>, vector<16x256xf32> -> vector<16x256xf32>
    %c0_21 = arith.constant 0 : index
    %c0_22 = arith.constant 0 : index
    %27 = vector.load %arg9[%c0_21, %c0_22] : memref<1x256xf32, #tpu.memory_space<vmem>>, vector<1x256xf32>
    %28 = vector.broadcast %27 : vector<1x256xf32> to vector<16x256xf32>
    %29 = arith.addf %26, %28 : vector<16x256xf32>
    %cst_23 = arith.constant 0.000000e+00 : f32
    %30 = vector.broadcast %cst_23 : f32 to vector<16x256xf32>
    %31 = arith.maximumf %29, %30 : vector<16x256xf32>
    %32 = arith.truncf %31 : vector<16x256xf32> to vector<16x256xbf16>
    %c0_24 = arith.constant 0 : index
    %c0_25 = arith.constant 0 : index
    %33 = vector.load %arg10[%c0_24, %c0_25] : memref<256x128xbf16, #tpu.memory_space<vmem>>, vector<256x128xbf16>
    %cst_26 = arith.constant dense<0.000000e+00> : vector<16x128xf32>
    %34 = tpu.matmul %32, %33, %cst_26 {dimension_numbers = #tpu.dot_dimension_numbers<[1], [0], [0], [1], [0, 0, 1, 1], [], []>} : vector<16x256xbf16>, vector<256x128xbf16>, vector<16x128xf32> -> vector<16x128xf32>
    %c0_27 = arith.constant 0 : index
    %c0_28 = arith.constant 0 : index
    %35 = vector.load %arg11[%c0_27, %c0_28] : memref<1x128xf32, #tpu.memory_space<vmem>>, vector<1x128xf32>
    %36 = vector.broadcast %35 : vector<1x128xf32> to vector<16x128xf32>
    %37 = arith.addf %34, %36 : vector<16x128xf32>
    %cst_29 = arith.constant 0.000000e+00 : f32
    %38 = vector.broadcast %cst_29 : f32 to vector<16x128xf32>
    %39 = arith.subf %38, %37 : vector<16x128xf32>
    %40 = math.exp %39 : vector<16x128xf32>
    %cst_30 = arith.constant 1.000000e+00 : f32
    %41 = vector.broadcast %cst_30 : f32 to vector<16x128xf32>
    %42 = arith.addf %41, %40 : vector<16x128xf32>
    %43 = tpu.reciprocal %42 {approx = true} : vector<16x128xf32> -> vector<16x128xf32>
    %cst_31 = arith.constant 2.000000e+00 : f32
    %44 = vector.broadcast %cst_31 : f32 to vector<16x128xf32>
    %45 = arith.mulf %44, %43 : vector<16x128xf32>
    %46 = arith.truncf %45 : vector<16x128xf32> to vector<16x128xbf16>
    %c0_32 = arith.constant 0 : index
    %c0_33 = arith.constant 0 : index
    %47 = vector.load %arg12[%c0_32, %c0_33] : memref<16x128xbf16, #tpu.memory_space<vmem>>, vector<16x128xbf16>
    tpu.vector_store %arg12[%c0_32, %c0_33], %46 {strides = array<i32>} : memref<16x128xbf16, #tpu.memory_space<vmem>>, vector<16x128xbf16>,
    return
  }
  func.func @transform_0(%arg0: i32) -> (i32, i32) {
    %c0_i32 = arith.constant 0 : i32
    %c0_i32_0 = arith.constant 0 : i32
    return %arg0, %c0_i32 : i32, i32
  }
  func.func @transform_1(%arg0: i32) -> (i32, i32) {
    %c0_i32 = arith.constant 0 : i32
    %c0_i32_0 = arith.constant 0 : i32
    %c0_i32_1 = arith.constant 0 : i32
    return %c0_i32, %c0_i32_0 : i32, i32
  }
  func.func @transform_2(%arg0: i32) -> (i32, i32) {
    %c0_i32 = arith.constant 0 : i32
    %c0_i32_0 = arith.constant 0 : i32
    %c0_i32_1 = arith.constant 0 : i32
    return %c0_i32, %c0_i32_0 : i32, i32
  }
  func.func @transform_3(%arg0: i32) -> (i32, i32) {
    %c0_i32 = arith.constant 0 : i32
    %c0_i32_0 = arith.constant 0 : i32
    %c0_i32_1 = arith.constant 0 : i32
    return %c0_i32, %c0_i32_0 : i32, i32
  }
  func.func @transform_4(%arg0: i32) -> (i32, i32) {
    %c0_i32 = arith.constant 0 : i32
    %c0_i32_0 = arith.constant 0 : i32
    %c0_i32_1 = arith.constant 0 : i32
    return %c0_i32, %c0_i32_0 : i32, i32
  }
  func.func @transform_5(%arg0: i32) -> (i32, i32) {
    %c0_i32 = arith.constant 0 : i32
    %c0_i32_0 = arith.constant 0 : i32
    %c0_i32_1 = arith.constant 0 : i32
    return %c0_i32, %c0_i32_0 : i32, i32
  }
  func.func @transform_6(%arg0: i32) -> (i32, i32) {
    %c0_i32 = arith.constant 0 : i32
    %c0_i32_0 = arith.constant 0 : i32
    %c0_i32_1 = arith.constant 0 : i32
    return %c0_i32, %c0_i32_0 : i32, i32
  }
  func.func @transform_7(%arg0: i32) -> (i32, i32) {
    %c0_i32 = arith.constant 0 : i32
    %c0_i32_0 = arith.constant 0 : i32
    %c0_i32_1 = arith.constant 0 : i32
    return %c0_i32, %c0_i32_0 : i32, i32
  }
  func.func @transform_8(%arg0: i32) -> (i32, i32) {
    %c0_i32 = arith.constant 0 : i32
    %c0_i32_0 = arith.constant 0 : i32
    %c0_i32_1 = arith.constant 0 : i32
    return %c0_i32, %c0_i32_0 : i32, i32
  }
  func.func @transform_9(%arg0: i32) -> (i32, i32) {
    %c0_i32 = arith.constant 0 : i32
    %c0_i32_0 = arith.constant 0 : i32
    %c0_i32_1 = arith.constant 0 : i32
    return %c0_i32, %c0_i32_0 : i32, i32
  }
  func.func @transform_10(%arg0: i32) -> (i32, i32) {
    %c0_i32 = arith.constant 0 : i32
    %c0_i32_0 = arith.constant 0 : i32
    %c0_i32_1 = arith.constant 0 : i32
    return %c0_i32, %c0_i32_0 : i32, i32
  }
  func.func @transform_11(%arg0: i32) -> (i32, i32) {
    %c0_i32 = arith.constant 0 : i32
    %c0_i32_0 = arith.constant 0 : i32
    return %arg0, %c0_i32 : i32, i32
  }
}

</mosaic_0001>

<bundles_post_ra>
// kernel: tpu_custom_call.1
= control target key start
LH: loop header
LB: loop body
LE: loop exit
PB: predicated region body
PF: predicated region fallthrough
CT: control target
= control target key end

     0   :  { %16 = vsyncpa [#allocation3], 0  ;;  %s2124_s0 = inlined_call_operand.hbm [shape: bf16[16,16], index: 0, kind: input, shape index: {}]   ;;  %s2125_s1 = inlined_call_operand.hbm [shape: bf16[16,256], index: 1, kind: input, shape index: {}]   ;;  %s2126_s2 = inlined_call_operand.hbm [shape: f32[1,256], index: 2, kind: input, shape index: {}]   ;;  %s2127_s3 = inlined_call_operand.hbm [shape: bf16[256,256], index: 3, kind: input, shape index: {}]   ;;  %s2128_s4 = inlined_call_operand.vmem [shape: f32[1,256], index: 4, kind: input, shape index: {}]   ;;  %s2129_s5 = inlined_call_operand.hbm [shape: bf16[256,256], index: 5, kind: input, shape index: {}]   ;;  %s2130_s6 = inlined_call_operand.vmem [shape: f32[1,256], index: 6, kind: input, shape index: {}]   ;;  %s2131_s7 = inlined_call_operand.hbm [shape: bf16[256,256], index: 7, kind: input, shape index: {}]   ;;  %s2132_s8 = inlined_call_operand.vmem [shape: f32[1,256], index: 8, kind: input, shape index: {}]   ;;  %s2133_s9 = inlined_call_operand.hbm [shape: bf16[256,128], index: 9, kind: input, shape index: {}]   ;;  %s2134_s10 = inlined_call_operand.vmem [shape: f32[1,128], index: 10, kind: input, shape index: {}]   ;;  %s2135_s11 = inlined_call_operand.hbm [shape: bf16[16,128], index: 11, kind: output, shape index: {}]  }
   0x1   :  { %17 = vsyncpa [#allocation6], 0 }
   0x2   :  { %18 = vsyncpa [#allocation9], 0 }
   0x3   :  { %19 = vsyncpa [#allocation12], 0  ;;  %s38_s19 = sshll.u32 %s2125_s1, 4  ;;  %s39_s19 = int_to_ptr.hbm [resolvable:$true] %s38_s19 }
   0x4   :  { %20 = vsyncpa [#allocation4], 0  ;;  %s1993_s20 = smov [#allocation5]   ;;  %s62_s24 = sshll.u32 %s2127_s3, 4  ;;  %s63_s24 = int_to_ptr.hbm [resolvable:$true] %s62_s24 }
   0x5   :  { %s40_s21 = sshll.u32 %s1993_s20, 4  ;;  %s1994_s25 = smov 128   ;;  %s41_s21 = int_to_ptr.vmem [resolvable:$true] %s40_s21 }
   0x6   :  { %s1995_s26 = smov 8   ;;  %s1996_s27 = smov [#allocation8]  }
   0x7   :  { %46 = dma.hbm_to_vmem [thread:$0]  %s39_s19, 256, %s41_s21, [#allocation6], %s1994_s25, %s1994_s25, %s1995_s26  }
   0x8   :  { %s64_s28 = sshll.u32 %s1996_s27, 4  ;;  %s92_s30 = sshll.u32 %s2131_s7, 4  ;;  %s65_s28 = int_to_ptr.vmem [resolvable:$true] %s64_s28  ;;  %s93_s30 = int_to_ptr.hbm [resolvable:$true] %s92_s30 }
   0x9   :  { %70 = dma.hbm_to_vmem [thread:$0]  %s63_s24, 4096, %s65_s28, [#allocation9], %s1994_s25, %s1994_s25, %s1995_s26  }
   0xa   :  { %s25_s13 = sshll.u32 %s2124_s0, 4  ;;  %s1997_s14 = smov [#allocation11]   ;;  %s26_s13 = int_to_ptr.hbm [resolvable:$true] %s25_s13 }
   0xb   :  { %s94_s15 = sshll.u32 %s1997_s14, 4  ;;  %s1998_s16 = smov [#allocation2]   ;;  %s95_s15 = int_to_ptr.vmem [resolvable:$true] %s94_s15 }
   0xc   :  { %100 = dma.hbm_to_vmem [thread:$0]  %s93_s30, 4096, %s95_s15, [#allocation12], %s1994_s25, %s1994_s25, %s1995_s26  }
   0xd   :  { %s27_s7 = sshll.u32 %s1998_s16, 4  ;;  %s1999_s17 = smov 64   ;;  %s28_s7 = int_to_ptr.vmem [resolvable:$true] %s27_s7 }
   0xe   :  { %s2000_s18 = smov 4   ;;  %s52_s0 = sshll.u32 %s2126_s2, 4  ;;  %s53_s0 = int_to_ptr.hbm [resolvable:$true] %s52_s0 }
   0xf   :  { %33 = dma.hbm_to_vmem [thread:$0]  %s26_s13, 128, %s28_s7, [#allocation3], %s1999_s17, %s1999_s17, %s2000_s18  }
  0x10   :  { %s2001_s21 = smov [#allocation7]   ;;  %s77_s27 = sshll.u32 %s2129_s5, 4  ;;  %s78_s27 = int_to_ptr.hbm [resolvable:$true] %s77_s27 }
  0x11   :  { %s54_s22 = sshll.u32 %s2001_s21, 4  ;;  %s2002_s28 = smov [#allocation10]   ;;  %s55_s22 = int_to_ptr.vmem [resolvable:$true] %s54_s22 }
  0x12   :  { %57 = dma.hbm_to_vmem [thread:$0]  %s53_s0, 32, %s55_s22, [#allocation6]  }
  0x13   :  { %s79_s29 = sshll.u32 %s2002_s28, 4  ;;  %s107_s3 = sshll.u32 %s2133_s9, 4  ;;  %s80_s29 = int_to_ptr.vmem [resolvable:$true] %s79_s29  ;;  %s108_s3 = int_to_ptr.hbm [resolvable:$true] %s107_s3 }
  0x14   :  { %85 = dma.hbm_to_vmem [thread:$0]  %s78_s27, 4096, %s80_s29, [#allocation9], %s1994_s25, %s1994_s25, %s1995_s26  }
  0x15   :  { %s2003_s2 = smov [#allocation13]  }
  0x16   :  { %s109_s12 = sshll.u32 %s2003_s2, 4  ;;  %s110_s12 = int_to_ptr.vmem [resolvable:$true] %s109_s12 }
  0x17   :  { %115 = dma.hbm_to_vmem [thread:$0]  %s108_s3, 2048, %s110_s12, [#allocation12], %s1999_s17, %s1999_s17, %s2000_s18  }
  0x18   :  { %1983 = dma.done.wait [#allocation3], 128  }
  0x19   :  { %1984 = vsyncadd [#allocation3], 4294967168 }
  0x1a   :  { %1985 = dma.done.wait [#allocation6], 288  }
  0x1b   :  { %1986 = vsyncadd [#allocation6], 4294967008 }
  0x1c   :  { %1987 = dma.done.wait [#allocation9], 8192  }
  0x1d   :  { %1988 = vsyncadd [#allocation9], 4294959104 }
  0x1e   :  { %1989 = dma.done.wait [#allocation12], 6144  }
  0x1f   :  { %1990 = vsyncadd [#allocation12], 4294961152  ;;  %v1194_v0 = vld [vmem:[#allocation5] sm:$0xf]  ;;  %v1652_v1 = vld [vmem:[#allocation5 + $0x4] sm:$0xf0] }
  0x20   :  { %v1651_v2 = vld [vmem:[#allocation5 + $0x4] sm:$0xf]  ;;  %v1195_v3 = vor.u32 %v1652_v1, %v1194_v0  ;;  %v1196_v4 = vld [vmem:[#allocation5 + $0x8] sm:$0xf0]  ;;  %v1650_v5 = vld [vmem:[#allocation2] sm:$0xff]  ;;  %vm172_vm0 = vcmask 130048  }
  0x21   :  { %v1260_v6 = vld [vmem:[#allocation8 + $0x70] sm:$0xf]  ;;  %v1199_v7 = vor.u32 %v1651_v2, %v1196_v4  ;;  %v1668_v8 = vld [vmem:[#allocation8 + $0x74] sm:$0xf0]  ;;  %v1667_v13 = vld [vmem:[#allocation8 + $0x74] sm:$0xf] }
  0x22   :  { %v1324_v9 = vld [vmem:[#allocation8 + $0xf0] sm:$0xf]  ;;  %v1684_v10 = vld [vmem:[#allocation8 + $0xf4] sm:$0xf0]  ;;  %183 = vmatpush.bf16.msra.mxu0 %v1195_v3  ;;  %v1261_v11 = vor.u32 %v1668_v8, %v1260_v6  ;;  %v1262_v14 = vld [vmem:[#allocation8 + $0x78] sm:$0xf0] }
  0x23   :  { %v1325_v12 = vor.u32 %v1684_v10, %v1324_v9  ;;  %v1683_v15 = vld [vmem:[#allocation8 + $0xf4] sm:$0xf]  ;;  %197 = vmatpush.bf16.msra.mxu1 %v1199_v7  ;;  %v1265_v16 = vor.u32 %v1667_v13, %v1262_v14  ;;  %v1326_v17 = vld [vmem:[#allocation8 + $0xf8] sm:$0xf0]  ;;  %v1252_v18 = vld [vmem:[#allocation8 + $0x60] sm:$0xf] }
  0x24   :  { %v1666_v19 = vld [vmem:[#allocation8 + $0x64] sm:$0xf0]  ;;  %408 = vmatpush.bf16.msra.mxu2 %v1261_v11  ;;  %v1329_v20 = vor.u32 %v1683_v15, %v1326_v17  ;;  %v1316_v22 = vld [vmem:[#allocation8 + $0xe0] sm:$0xf]  ;;  %v1665_v24 = vld [vmem:[#allocation8 + $0x64] sm:$0xf] }
  0x25   :  { %422 = vmatpush.bf16.msra.mxu3 %v1325_v12  ;;  %v1253_v21 = vor.u32 %v1666_v19, %v1252_v18  ;;  %v1682_v23 = vld [vmem:[#allocation8 + $0xe4] sm:$0xf0]  ;;  %1200 = vmatmul.msk.bf16.vlgmr.msra.gmra.mxu0 %vm172_vm0, %v1650_v5  ;;  %v1254_v26 = vld [vmem:[#allocation8 + $0x68] sm:$0xf0]  ;;  %v1681_v27 = vld [vmem:[#allocation8 + $0xe4] sm:$0xf] }
  0x26   :  { %v1317_v25 = vor.u32 %v1682_v23, %v1316_v22  ;;  %v1318_v28 = vld [vmem:[#allocation8 + $0xe8] sm:$0xf0]  ;;  %1201 = vmatmul.msk.bf16.vlgmr.msra.gmra.mxu1 %vm172_vm0, %v1650_v5  ;;  %436 = vmatpush.bf16.msrb.mxu0 %v1265_v16  ;;  %v1257_v29 = vor.u32 %v1665_v24, %v1254_v26  ;;  %v1244_v30 = vld [vmem:[#allocation8 + $0x50] sm:$0xf]  ;;  %v1664_v31 = vld [vmem:[#allocation8 + $0x54] sm:$0xf0] }
  0x27   :  { %v1308_v32 = vld [vmem:[#allocation8 + $0xd0] sm:$0xf]  ;;  %450 = vmatpush.bf16.msrb.mxu1 %v1329_v20  ;;  %v1321_v33 = vor.u32 %v1681_v27, %v1318_v28  ;;  %v1680_v34 = vld [vmem:[#allocation8 + $0xd4] sm:$0xf0]  ;;  %v1663_v35 = vld [vmem:[#allocation8 + $0x54] sm:$0xf]  ;;  %v1245_v37 = vor.u32 %v1664_v31, %v1244_v30 }
  0x28   :  { %v1246_v36 = vld [vmem:[#allocation8 + $0x58] sm:$0xf0]  ;;  %409 = vmatpush.bf16.msra.mxu2 %v1253_v21  ;;  %v1309_v38 = vor.u32 %v1680_v34, %v1308_v32  ;;  %v1679_v39 = vld [vmem:[#allocation8 + $0xd4] sm:$0xf]  ;;  %v1236_v41 = vld [vmem:[#allocation8 + $0x40] sm:$0xf] }
  0x29   :  { %423 = vmatpush.bf16.msra.mxu3 %v1317_v25  ;;  %v1310_v40 = vld [vmem:[#allocation8 + $0xd8] sm:$0xf0]  ;;  %v1662_v42 = vld [vmem:[#allocation8 + $0x44] sm:$0xf0]  ;;  %v1300_v43 = vld [vmem:[#allocation8 + $0xc0] sm:$0xf]  ;;  %v1249_v45 = vor.u32 %v1663_v35, %v1246_v36 }
  0x2a   :  { %v1678_v44 = vld [vmem:[#allocation8 + $0xc4] sm:$0xf0]  ;;  %437 = vmatpush.bf16.msrb.mxu0 %v1257_v29  ;;  %v1313_v46 = vor.u32 %v1679_v39, %v1310_v40  ;;  %v1661_v47 = vld [vmem:[#allocation8 + $0x44] sm:$0xf]  ;;  %v1238_v48 = vld [vmem:[#allocation8 + $0x48] sm:$0xf0]  ;;  %v1237_v49 = vor.u32 %v1662_v42, %v1236_v41 }
  0x2b   :  { %451 = vmatpush.bf16.msrb.mxu1 %v1321_v33  ;;  %v1301_v50 = vor.u32 %v1678_v44, %v1300_v43  ;;  %v1677_v51 = vld [vmem:[#allocation8 + $0xc4] sm:$0xf]  ;;  %v1302_v52 = vld [vmem:[#allocation8 + $0xc8] sm:$0xf0]  ;;  %v1241_v53 = vor.u32 %v1661_v47, %v1238_v48  ;;  %v1228_v55 = vld [vmem:[#allocation8 + $0x30] sm:$0xf] }
  0x2c   :  { %410 = vmatpush.bf16.msra.mxu2 %v1245_v37  ;;  %v1305_v54 = vor.u32 %v1677_v51, %v1302_v52  ;;  %v1660_v56 = vld [vmem:[#allocation8 + $0x34] sm:$0xf0]  ;;  %v1292_v57 = vld [vmem:[#allocation8 + $0xb0] sm:$0xf]  ;;  %v1659_v60 = vld [vmem:[#allocation8 + $0x34] sm:$0xf] }
  0x2d   :  { %424 = vmatpush.bf16.msra.mxu3 %v1309_v38  ;;  %v1229_v58 = vor.u32 %v1660_v56, %v1228_v55  ;;  %v1676_v59 = vld [vmem:[#allocation8 + $0xb4] sm:$0xf0]  ;;  %v1230_v61 = vld [vmem:[#allocation8 + $0x38] sm:$0xf0]  ;;  %v1675_v0 = vld [vmem:[#allocation8 + $0xb4] sm:$0xf] }
  0x2e   :  { %438 = vmatpush.bf16.msrb.mxu0 %v1249_v45  ;;  %v1293_v62 = vor.u32 %v1676_v59, %v1292_v57  ;;  %v1233_v63 = vor.u32 %v1659_v60, %v1230_v61  ;;  %v1294_v1 = vld [vmem:[#allocation8 + $0xb8] sm:$0xf0]  ;;  %v1220_v3 = vld [vmem:[#allocation8 + $0x20] sm:$0xf]  ;;  %v1658_v4 = vld [vmem:[#allocation8 + $0x24] sm:$0xf0] }
  0x2f   :  { %452 = vmatpush.bf16.msrb.mxu1 %v1313_v46  ;;  %v1297_v2 = vor.u32 %v1675_v0, %v1294_v1  ;;  %v1221_v5 = vor.u32 %v1658_v4, %v1220_v3  ;;  %v1284_v6 = vld [vmem:[#allocation8 + $0xa0] sm:$0xf]  ;;  %v1674_v7 = vld [vmem:[#allocation8 + $0xa4] sm:$0xf0]  ;;  %v1657_v8 = vld [vmem:[#allocation8 + $0x24] sm:$0xf] }
  0x30   :  { %411 = vmatpush.bf16.msra.mxu2 %v1237_v49  ;;  %v1285_v9 = vor.u32 %v1674_v7, %v1284_v6  ;;  %v1222_v10 = vld [vmem:[#allocation8 + $0x28] sm:$0xf0]  ;;  %v1673_v11 = vld [vmem:[#allocation8 + $0xa4] sm:$0xf]  ;;  %v1212_v15 = vld [vmem:[#allocation8 + $0x10] sm:$0xf] }
  0x31   :  { %425 = vmatpush.bf16.msra.mxu3 %v1301_v50  ;;  %v1286_v12 = vld [vmem:[#allocation8 + $0xa8] sm:$0xf0]  ;;  %v1225_v13 = vor.u32 %v1657_v8, %v1222_v10  ;;  %v1656_v16 = vld [vmem:[#allocation8 + $0x14] sm:$0xf0]  ;;  %v1276_v17 = vld [vmem:[#allocation8 + $0x90] sm:$0xf] }
  0x32   :  { %439 = vmatpush.bf16.msrb.mxu0 %v1241_v53  ;;  %v1289_v14 = vor.u32 %v1673_v11, %v1286_v12  ;;  %v1213_v18 = vor.u32 %v1656_v16, %v1212_v15  ;;  %v1672_v19 = vld [vmem:[#allocation8 + $0x94] sm:$0xf0]  ;;  %v1655_v20 = vld [vmem:[#allocation8 + $0x14] sm:$0xf]  ;;  %v1214_v21 = vld [vmem:[#allocation8 + $0x18] sm:$0xf0] }
  0x33   :  { %453 = vmatpush.bf16.msrb.mxu1 %v1305_v54  ;;  %v1277_v22 = vor.u32 %v1672_v19, %v1276_v17  ;;  %v1217_v23 = vor.u32 %v1655_v20, %v1214_v21  ;;  %v1671_v24 = vld [vmem:[#allocation8 + $0x94] sm:$0xf]  ;;  %v1278_v25 = vld [vmem:[#allocation8 + $0x98] sm:$0xf0]  ;;  %v1204_v27 = vld [vmem:[#allocation8] sm:$0xf] }
  0x34   :  { %412 = vmatpush.bf16.msra.mxu2 %v1229_v58  ;;  %v1281_v26 = vor.u32 %v1671_v24, %v1278_v25  ;;  %v1654_v28 = vld [vmem:[#allocation8 + $0x4] sm:$0xf0]  ;;  %v1268_v29 = vld [vmem:[#allocation8 + $0x80] sm:$0xf]  ;;  %v1653_v32 = vld [vmem:[#allocation8 + $0x4] sm:$0xf] }
  0x35   :  { %426 = vmatpush.bf16.msra.mxu3 %v1293_v62  ;;  %v1205_v30 = vor.u32 %v1654_v28, %v1204_v27  ;;  %v1670_v31 = vld [vmem:[#allocation8 + $0x84] sm:$0xf0]  ;;  %v1206_v33 = vld [vmem:[#allocation8 + $0x8] sm:$0xf0]  ;;  %v1669_v36 = vld [vmem:[#allocation8 + $0x84] sm:$0xf] }
  0x36   :  { %440 = vmatpush.bf16.msrb.mxu0 %v1233_v63  ;;  %v1269_v34 = vor.u32 %v1670_v31, %v1268_v29  ;;  %v1209_v35 = vor.u32 %v1653_v32, %v1206_v33  ;;  %v1270_v37 = vld [vmem:[#allocation8 + $0x88] sm:$0xf0]  ;;  %v1452_v39 = vld [vmem:[#allocation10 + $0xf0] sm:$0xf]  ;;  %v1716_v40 = vld [vmem:[#allocation10 + $0xf4] sm:$0xf0] }
  0x37   :  { %454 = vmatpush.bf16.msrb.mxu1 %v1297_v2  ;;  %v1273_v38 = vor.u32 %v1669_v36, %v1270_v37  ;;  %v1715_v41 = vld [vmem:[#allocation10 + $0xf4] sm:$0xf]  ;;  %v1453_v42 = vor.u32 %v1716_v40, %v1452_v39  ;;  %v1454_v43 = vld [vmem:[#allocation10 + $0xf8] sm:$0xf0]  ;;  %v1444_v44 = vld [vmem:[#allocation10 + $0xe0] sm:$0xf] }
  0x38   :  { %413 = vmatpush.bf16.msra.mxu2 %v1221_v5  ;;  %v1714_v45 = vld [vmem:[#allocation10 + $0xe4] sm:$0xf0]  ;;  %v1457_v46 = vor.u32 %v1715_v41, %v1454_v43  ;;  %v1713_v47 = vld [vmem:[#allocation10 + $0xe4] sm:$0xf]  ;;  %v1446_v48 = vld [vmem:[#allocation10 + $0xe8] sm:$0xf0] }
  0x39   :  { %427 = vmatpush.bf16.msra.mxu3 %v1285_v9  ;;  %v1388_v49 = vld [vmem:[#allocation10 + $0x70] sm:$0xf]  ;;  %v1445_v50 = vor.u32 %v1714_v45, %v1444_v44  ;;  %v1700_v51 = vld [vmem:[#allocation10 + $0x74] sm:$0xf0]  ;;  %v1699_v52 = vld [vmem:[#allocation10 + $0x74] sm:$0xf]  ;;  %v1449_v54 = vor.u32 %v1713_v47, %v1446_v48 }
  0x3a   :  { %441 = vmatpush.bf16.msrb.mxu0 %v1225_v13  ;;  %v1390_v53 = vld [vmem:[#allocation10 + $0x78] sm:$0xf0]  ;;  %v1389_v55 = vor.u32 %v1700_v51, %v1388_v49  ;;  %v1436_v57 = vld [vmem:[#allocation10 + $0xd0] sm:$0xf]  ;;  %v1712_v58 = vld [vmem:[#allocation10 + $0xd4] sm:$0xf0] }
  0x3b   :  { %455 = vmatpush.bf16.msrb.mxu1 %v1289_v14  ;;  %v1393_v56 = vor.u32 %v1699_v52, %v1390_v53  ;;  %v1711_v59 = vld [vmem:[#allocation10 + $0xd4] sm:$0xf]  ;;  %v1438_v60 = vld [vmem:[#allocation10 + $0xd8] sm:$0xf0]  ;;  %v1380_v61 = vld [vmem:[#allocation10 + $0x60] sm:$0xf]  ;;  %v1437_v2 = vor.u32 %v1712_v58, %v1436_v57 }
  0x3c   :  { %414 = vmatpush.bf16.msra.mxu2 %v1213_v18  ;;  %v1698_v62 = vld [vmem:[#allocation10 + $0x64] sm:$0xf0]  ;;  %v1697_v0 = vld [vmem:[#allocation10 + $0x64] sm:$0xf]  ;;  %v1382_v1 = vld [vmem:[#allocation10 + $0x68] sm:$0xf0]  ;;  %v1441_v4 = vor.u32 %v1711_v59, %v1438_v60 }
  0x3d   :  { %428 = vmatpush.bf16.msra.mxu3 %v1277_v22  ;;  %v1381_v63 = vor.u32 %v1698_v62, %v1380_v61  ;;  %v1385_v3 = vor.u32 %v1697_v0, %v1382_v1  ;;  %v1428_v5 = vld [vmem:[#allocation10 + $0xc0] sm:$0xf]  ;;  %v1710_v6 = vld [vmem:[#allocation10 + $0xc4] sm:$0xf0]  ;;  %v1709_v7 = vld [vmem:[#allocation10 + $0xc4] sm:$0xf] }
  0x3e   :  { %442 = vmatpush.bf16.msrb.mxu0 %v1217_v23  ;;  %v1430_v8 = vld [vmem:[#allocation10 + $0xc8] sm:$0xf0]  ;;  %v1429_v9 = vor.u32 %v1710_v6, %v1428_v5  ;;  %v151_v11 = vld [vmem:[#allocation7] sm:$0x3]  ;;  %v1372_v28 = vld [vmem:[#allocation10 + $0x50] sm:$0xf] }
  0x3f   :  { %456 = vmatpush.bf16.msrb.mxu1 %v1281_v26  ;;  %v1433_v10 = vor.u32 %v1709_v7, %v1430_v8  ;;  %v153_v14 = vperm.slane %v151_v11, 0  ;;  %v154_v15 = vperm.slane %v151_v11, 1  ;;  %v1696_v29 = vld [vmem:[#allocation10 + $0x54] sm:$0xf0]  ;;  %v1374_v32 = vld [vmem:[#allocation10 + $0x58] sm:$0xf0] }
  0x40   :  { %415 = vmatpush.bf16.msra.mxu2 %v1205_v30  ;;  %v1695_v30 = vld [vmem:[#allocation10 + $0x54] sm:$0xf]  ;;  %v1373_v31 = vor.u32 %v1696_v29, %v1372_v28  ;;  %v1364_v40 = vld [vmem:[#allocation10 + $0x40] sm:$0xf]  ;;  %v1694_v41 = vld [vmem:[#allocation10 + $0x44] sm:$0xf0] }
  0x41   :  { %429 = vmatpush.bf16.msra.mxu3 %v1269_v34  ;;  %v1377_v33 = vor.u32 %v1695_v30, %v1374_v32  ;;  %v1420_v34 = vld [vmem:[#allocation10 + $0xb0] sm:$0xf]  ;;  %v1707_v36 = vld [vmem:[#allocation10 + $0xb4] sm:$0xf]  ;;  %v1365_v43 = vor.u32 %v1694_v41, %v1364_v40  ;;  %v1366_v44 = vld [vmem:[#allocation10 + $0x48] sm:$0xf0] }
  0x42   :  { %443 = vmatpush.bf16.msrb.mxu0 %v1209_v35  ;;  %v1708_v35 = vld [vmem:[#allocation10 + $0xb4] sm:$0xf0]  ;;  %v1706_v47 = vld [vmem:[#allocation10 + $0xa4] sm:$0xf0]  ;;  %v1705_v48 = vld [vmem:[#allocation10 + $0xa4] sm:$0xf] }
  0x43   :  { %457 = vmatpush.bf16.msrb.mxu1 %v1273_v38  ;;  %v1421_v37 = vor.u32 %v1708_v35, %v1420_v34  ;;  %v1422_v38 = vld [vmem:[#allocation10 + $0xb8] sm:$0xf0]  ;;  %v1356_v52 = vld [vmem:[#allocation10 + $0x30] sm:$0xf]  ;;  %v1692_v53 = vld [vmem:[#allocation10 + $0x34] sm:$0xf0] }
  0x44   :  { %668 = vmatpush.bf16.msrb.mxu2 %v1389_v55  ;;  %v1425_v39 = vor.u32 %v1707_v36, %v1422_v38  ;;  %v1357_v55 = vor.u32 %v1692_v53, %v1356_v52  ;;  %v1404_v58 = vld [vmem:[#allocation10 + $0x90] sm:$0xf]  ;;  %v1704_v59 = vld [vmem:[#allocation10 + $0x94] sm:$0xf0]  ;;  %v1703_v60 = vld [vmem:[#allocation10 + $0x94] sm:$0xf] }
  0x45   :  { %682 = vmatpush.bf16.msrb.mxu3 %v1453_v42  ;;  %v1693_v42 = vld [vmem:[#allocation10 + $0x44] sm:$0xf]  ;;  %v1405_v61 = vor.u32 %v1704_v59, %v1404_v58  ;;  %v1406_v62 = vld [vmem:[#allocation10 + $0x98] sm:$0xf0]  ;;  %v1348_v0 = vld [vmem:[#allocation10 + $0x20] sm:$0xf] }
  0x46   :  { %696 = vmatpush.bf16.msra.mxu0 %v1393_v56  ;;  %v1369_v45 = vor.u32 %v1693_v42, %v1366_v44  ;;  %v1358_v56 = vld [vmem:[#allocation10 + $0x38] sm:$0xf0]  ;;  %v1690_v1 = vld [vmem:[#allocation10 + $0x24] sm:$0xf0]  ;;  %v1396_v6 = vld [vmem:[#allocation10 + $0x80] sm:$0xf] }
  0x47   :  { %710 = vmatpush.bf16.msra.mxu1 %v1457_v46  ;;  %v1412_v46 = vld [vmem:[#allocation10 + $0xa0] sm:$0xf]  ;;  %v1702_v7 = vld [vmem:[#allocation10 + $0x84] sm:$0xf0]  ;;  %v1701_v8 = vld [vmem:[#allocation10 + $0x84] sm:$0xf] }
  0x48   :  { %669 = vmatpush.bf16.msrb.mxu2 %v1381_v63  ;;  %v1413_v49 = vor.u32 %v1706_v47, %v1412_v46  ;;  %v1409_v63 = vor.u32 %v1703_v60, %v1406_v62  ;;  %v1582_v28 = vld [vmem:[#allocation11 + $0xf8] sm:$0xf0]  ;;  %v1572_v29 = vld [vmem:[#allocation11 + $0xe0] sm:$0xf]  ;;  %v1746_v30 = vld [vmem:[#allocation11 + $0xe4] sm:$0xf0] }
  0x49   :  { %683 = vmatpush.bf16.msrb.mxu3 %v1445_v50  ;;  %v1414_v50 = vld [vmem:[#allocation10 + $0xa8] sm:$0xf0]  ;;  %v1745_v32 = vld [vmem:[#allocation11 + $0xe4] sm:$0xf]  ;;  %v1516_v34 = vld [vmem:[#allocation11 + $0x70] sm:$0xf]  ;;  %v1573_v35 = vor.u32 %v1746_v30, %v1572_v29 }
  0x4a   :  { %697 = vmatpush.bf16.msra.mxu0 %v1385_v3  ;;  %v1417_v51 = vor.u32 %v1705_v48, %v1414_v50  ;;  %v1349_v3 = vor.u32 %v1690_v1, %v1348_v0  ;;  %v1732_v36 = vld [vmem:[#allocation11 + $0x74] sm:$0xf0]  ;;  %v1518_v38 = vld [vmem:[#allocation11 + $0x78] sm:$0xf0]  ;;  %v242_v42 = vld [vmem:[%s2128_s4] sm:$0x3] }
  0x4b   :  { %711 = vmatpush.bf16.msra.mxu1 %v1449_v54  ;;  %v1691_v54 = vld [vmem:[#allocation10 + $0x34] sm:$0xf]  ;;  %v1517_v40 = vor.u32 %v1732_v36, %v1516_v34  ;;  %v245_v44 = vperm.slane %v242_v42, 1  ;;  %v244_v48 = vperm.slane %v242_v42, 0  ;;  %v1726_v34 = vld [vmem:[#allocation11 + $0x44] sm:$0xf0] }
  0x4c   :  { %670 = vmatpush.bf16.msrb.mxu2 %v1373_v31  ;;  %v1361_v57 = vor.u32 %v1691_v54, %v1358_v56  ;;  %v1739_v30 = vld [vmem:[#allocation11 + $0xb4] sm:$0xf]  ;;  %s1172_s7 = sshll.u32 %s2135_s11, 4  ;;  %s1173_s7 = int_to_ptr.hbm [resolvable:$true] %s1172_s7 }
  0x4d   :  { %684 = vmatpush.bf16.msrb.mxu3 %v1437_v2  ;;  %v1689_v2 = vld [vmem:[#allocation10 + $0x24] sm:$0xf] }
  0x4e   :  { %698 = vmatpush.bf16.msra.mxu0 %v1377_v33  ;;  %v1574_v33 = vld [vmem:[#allocation11 + $0xe8] sm:$0xf0] }
  0x4f   :  { %712 = vmatpush.bf16.msra.mxu1 %v1441_v4  ;;  %v1350_v4 = vld [vmem:[#allocation10 + $0x28] sm:$0xf0] }
  0x50   :  { %671 = vmatpush.bf16.msrb.mxu2 %v1365_v43  ;;  %v1353_v5 = vor.u32 %v1689_v2, %v1350_v4  ;;  %v1744_v4 = vld [vmem:[#allocation11 + $0xd4] sm:$0xf0] }
  0x51   :  { %685 = vmatpush.bf16.msrb.mxu3 %v1429_v9  ;;  %v1397_v9 = vor.u32 %v1702_v7, %v1396_v6  ;;  %v1566_v7 = vld [vmem:[#allocation11 + $0xd8] sm:$0xf0] }
  0x52   :  { %699 = vmatpush.bf16.msra.mxu0 %v1369_v45 }
  0x53   :  { %713 = vmatpush.bf16.msra.mxu1 %v1433_v10  ;;  %v1398_v10 = vld [vmem:[#allocation10 + $0x88] sm:$0xf0] }
  0x54   :  { %672 = vmatpush.bf16.msrb.mxu2 %v1357_v55  ;;  %v1401_v11 = vor.u32 %v1701_v8, %v1398_v10  ;;  %v1730_v10 = vld [vmem:[#allocation11 + $0x64] sm:$0xf0] }
  0x55   :  { %686 = vmatpush.bf16.msrb.mxu3 %v1421_v37  ;;  %v1731_v37 = vld [vmem:[#allocation11 + $0x74] sm:$0xf] }
  0x56   :  { %700 = vmatpush.bf16.msra.mxu0 %v1361_v57  ;;  %v1521_v41 = vor.u32 %v1731_v37, %v1518_v38  ;;  %v1494_v37 = vld [vmem:[#allocation11 + $0x48] sm:$0xf0] }
  0x57   :  { %714 = vmatpush.bf16.msra.mxu1 %v1425_v39  ;;  %v1577_v39 = vor.u32 %v1745_v32, %v1574_v33  ;;  %v1492_v33 = vld [vmem:[#allocation11 + $0x40] sm:$0xf] }
  0x58   :  { %673 = vmatpush.bf16.msrb.mxu2 %v1349_v3  ;;  %v1564_v3 = vld [vmem:[#allocation11 + $0xd0] sm:$0xf]  ;;  %v1493_v36 = vor.u32 %v1726_v34, %v1492_v33 }
  0x59   :  { %687 = vmatpush.bf16.msrb.mxu3 %v1413_v49  ;;  %v1565_v6 = vor.u32 %v1744_v4, %v1564_v3  ;;  %v1526_v3 = vld [vmem:[#allocation11 + $0x88] sm:$0xf0] }
  0x5a   :  { %701 = vmatpush.bf16.msra.mxu0 %v1353_v5  ;;  %v1743_v5 = vld [vmem:[#allocation11 + $0xd4] sm:$0xf] }
  0x5b   :  { %715 = vmatpush.bf16.msra.mxu1 %v1417_v51  ;;  %v1569_v8 = vor.u32 %v1743_v5, %v1566_v7  ;;  %v1468_v5 = vld [vmem:[#allocation11 + $0x10] sm:$0xf]  ;;  %v1719_v7 = vld [vmem:[#allocation11 + $0x14] sm:$0xf] }
  0x5d   :  { %688 = vmatpush.bf16.msrb.mxu3 %v1405_v61 }
  0x5f   :  { %716 = vmatpush.bf16.msra.mxu1 %v1409_v63 }
  0x61   :  { %689 = vmatpush.bf16.msrb.mxu3 %v1397_v9  ;;  %v1508_v9 = vld [vmem:[#allocation11 + $0x60] sm:$0xf] }
  0x63   :  { %717 = vmatpush.bf16.msra.mxu1 %v1401_v11  ;;  %v1729_v11 = vld [vmem:[#allocation11 + $0x64] sm:$0xf] }
  0xa2   :  { %v185_v12 = vpop.f32.mrf.mxu0 }
  0xa3   :  { %v199_v13 = vpop.f32.mrf.mxu1  ;;  %v186_v16 = vadd.f32 %v185_v12, %v153_v14  ;;  %v1340_v12 = vld [vmem:[#allocation10 + $0x10] sm:$0xf] }
  0xa4   :  { %v200_v17 = vadd.f32 %v199_v13, %v154_v15  ;;  %v1688_v13 = vld [vmem:[#allocation10 + $0x14] sm:$0xf0] }
  0xa5   :  { %v204_v22 = vmax.f32 %v186_v16, 0.0  ;;  %v1342_v16 = vld [vmem:[#allocation10 + $0x18] sm:$0xf0] }
  0xa6   :  { %v205_v24 = vmax.f32 %v200_v17, 0.0 }
  0xaa   :  { %v187_v18 = vpop.f32.mrf.mxu0 }
  0xab   :  { %v188_v19 = vadd.f32 %v187_v18, %v153_v14  ;;  %v201_v20 = vpop.f32.mrf.mxu1  ;;  %v1687_v14 = vld [vmem:[#allocation10 + $0x14] sm:$0xf]  ;;  %v1332_v18 = vld [vmem:[#allocation10] sm:$0xf] }
  0xac   :  { %v202_v21 = vadd.f32 %v201_v20, %v154_v15  ;;  %v1341_v15 = vor.u32 %v1688_v13, %v1340_v12  ;;  %v1345_v17 = vor.u32 %v1687_v14, %v1342_v16  ;;  %v1685_v20 = vld [vmem:[#allocation10 + $0x4] sm:$0xf]  ;;  %v1509_v12 = vor.u32 %v1730_v10, %v1508_v9  ;;  %v1510_v13 = vld [vmem:[#allocation11 + $0x68] sm:$0xf0]  ;;  %v1556_v14 = vld [vmem:[#allocation11 + $0xc0] sm:$0xf] }
  0xad   :  { %v206_v23 = vmax.f32 %v188_v19, 0.0  ;;  %v1686_v19 = vld [vmem:[#allocation10 + $0x4] sm:$0xf0]  ;;  %v1513_v16 = vor.u32 %v1729_v11, %v1510_v13  ;;  %v1470_v9 = vld [vmem:[#allocation11 + $0x18] sm:$0xf0] }
  0xae   :  { %v207_v25 = vmax.f32 %v202_v21, 0.0  ;;  %674 = vmatpush.bf16.msrb.mxu2 %v1341_v15  ;;  %702 = vmatpush.bf16.msra.mxu0 %v1345_v17  ;;  %v1333_v21 = vor.u32 %v1686_v19, %v1332_v18  ;;  %v1742_v15 = vld [vmem:[#allocation11 + $0xc4] sm:$0xf0]  ;;  %v1741_v18 = vld [vmem:[#allocation11 + $0xc4] sm:$0xf]  ;;  %v1473_v10 = vor.u32 %v1719_v7, %v1470_v9 }
  0xaf   :  { %v208_v26 = vpack.c.bf16 %v206_v23, %v204_v22  ;;  %v1334_v22 = vld [vmem:[#allocation10 + $0x8] sm:$0xf0]  ;;  %v1557_v17 = vor.u32 %v1742_v15, %v1556_v14  ;;  %v1460_v11 = vld [vmem:[#allocation11] sm:$0xf]  ;;  %v1717_v13 = vld [vmem:[#allocation11 + $0x4] sm:$0xf] }
  0xb0   :  { %v209_v27 = vpack.c.bf16 %v207_v25, %v205_v24  ;;  %v1337_v23 = vor.u32 %v1685_v20, %v1334_v22  ;;  %v1580_v24 = vld [vmem:[#allocation11 + $0xf0] sm:$0xf]  ;;  %v1748_v25 = vld [vmem:[#allocation11 + $0xf4] sm:$0xf0]  ;;  %v1558_v19 = vld [vmem:[#allocation11 + $0xc8] sm:$0xf0] }
  0xb1   :  { %416 = vmatmul.bf16.vlgmr.msra.gmra.mxu2 %v208_v26  ;;  %444 = vmatmul.bf16.vlgmr.msrb.gmra.mxu0 %v208_v26  ;;  %v1747_v26 = vld [vmem:[#allocation11 + $0xf4] sm:$0xf]  ;;  %v1561_v20 = vor.u32 %v1741_v18, %v1558_v19  ;;  %v1728_v22 = vld [vmem:[#allocation11 + $0x54] sm:$0xf0]  ;;  %v1462_v15 = vld [vmem:[#allocation11 + $0x8] sm:$0xf0] }
  0xb2   :  { %430 = vmatmul.bf16.vlgmr.msra.gmra.mxu3 %v209_v27  ;;  %458 = vmatmul.bf16.vlgmr.msrb.gmra.mxu1 %v209_v27  ;;  %v1581_v27 = vor.u32 %v1748_v25, %v1580_v24  ;;  %v1585_v31 = vor.u32 %v1747_v26, %v1582_v28  ;;  %v1502_v25 = vld [vmem:[#allocation11 + $0x58] sm:$0xf0]  ;;  %v1740_v28 = vld [vmem:[#allocation11 + $0xb4] sm:$0xf0]  ;;  %v1763_v19 = vld [vmem:[#allocation13 + $0x70] sm:$0xff] }
  0xb3   :  { %675 = vmatpush.bf16.msrb.mxu2 %v1333_v21  ;;  %703 = vmatpush.bf16.msra.mxu0 %v1337_v23  ;;  %v1500_v21 = vld [vmem:[#allocation11 + $0x50] sm:$0xf]  ;;  %v1727_v23 = vld [vmem:[#allocation11 + $0x54] sm:$0xf]  ;;  %v1756_v18 = vld [vmem:[#allocation13 + $0x38] sm:$0xff] }
  0xb4   :  { %942 = vmatpush.bf16.msra.mxu3 %v1581_v27  ;;  %970 = vmatpush.bf16.msrb.mxu1 %v1585_v31  ;;  %v1501_v24 = vor.u32 %v1728_v22, %v1500_v21  ;;  %v1505_v26 = vor.u32 %v1727_v23, %v1502_v25  ;;  %v1548_v27 = vld [vmem:[#allocation11 + $0xb0] sm:$0xf]  ;;  %v1550_v31 = vld [vmem:[#allocation11 + $0xb8] sm:$0xf0] }
  0xb5   :  { %v1549_v29 = vor.u32 %v1740_v28, %v1548_v27  ;;  %v1553_v32 = vor.u32 %v1739_v30, %v1550_v31 }
  0xb7   :  { %928 = vmatpush.bf16.msra.mxu2 %v1517_v40  ;;  %956 = vmatpush.bf16.msrb.mxu0 %v1521_v41  ;;  %v1738_v40 = vld [vmem:[#allocation11 + $0xa4] sm:$0xf0]  ;;  %v1737_v41 = vld [vmem:[#allocation11 + $0xa4] sm:$0xf] }
  0xb8   :  { %943 = vmatpush.bf16.msra.mxu3 %v1573_v35  ;;  %971 = vmatpush.bf16.msrb.mxu1 %v1577_v39  ;;  %v1725_v35 = vld [vmem:[#allocation11 + $0x44] sm:$0xf]  ;;  %v1540_v39 = vld [vmem:[#allocation11 + $0xa0] sm:$0xf] }
  0xb9   :  { %v1497_v38 = vor.u32 %v1725_v35, %v1494_v37  ;;  %v1541_v42 = vor.u32 %v1738_v40, %v1540_v39 }
  0xbb   :  { %929 = vmatpush.bf16.msra.mxu2 %v1509_v12  ;;  %957 = vmatpush.bf16.msrb.mxu0 %v1513_v16  ;;  %v1718_v12 = vld [vmem:[#allocation11 + $0x4] sm:$0xf0]  ;;  %v1465_v16 = vor.u32 %v1717_v13, %v1462_v15 }
  0xbc   :  { %944 = vmatpush.bf16.msra.mxu3 %v1565_v6  ;;  %972 = vmatpush.bf16.msrb.mxu1 %v1569_v8  ;;  %v1720_v6 = vld [vmem:[#allocation11 + $0x14] sm:$0xf0]  ;;  %v1461_v14 = vor.u32 %v1718_v12, %v1460_v11 }
  0xbd   :  { %v1469_v8 = vor.u32 %v1720_v6, %v1468_v5 }
  0xbf   :  { %930 = vmatpush.bf16.msra.mxu2 %v1501_v24  ;;  %958 = vmatpush.bf16.msrb.mxu0 %v1505_v26 }
  0xc0   :  { %945 = vmatpush.bf16.msra.mxu3 %v1557_v17  ;;  %973 = vmatpush.bf16.msrb.mxu1 %v1561_v20  ;;  %v1764_v17 = vld [vmem:[#allocation13 + $0x78] sm:$0xff]  ;;  %v502_v20 = vld [vmem:[%s2130_s6] sm:$0x3] }
  0xc1   :  { %v505_v23 = vperm.slane %v502_v20, 1  ;;  %v504_v27 = vperm.slane %v502_v20, 0 }
  0xc3   :  { %931 = vmatpush.bf16.msra.mxu2 %v1493_v36  ;;  %959 = vmatpush.bf16.msrb.mxu0 %v1497_v38 }
  0xc4   :  { %946 = vmatpush.bf16.msra.mxu3 %v1549_v29  ;;  %974 = vmatpush.bf16.msrb.mxu1 %v1553_v32 }
  0xc8   :  { %947 = vmatpush.bf16.msra.mxu3 %v1541_v42 }
 0x12e   :  { %v445_v43 = vpop.f32.mrf.mxu0 }
 0x12f   :  { %v459_v45 = vpop.f32.mrf.mxu1  ;;  %v446_v46 = vadd.f32 %v445_v43, %v245_v44  ;;  %v1542_v43 = vld [vmem:[#allocation11 + $0xa8] sm:$0xf0] }
 0x131   :  { %v460_v51 = vadd.f32 %v459_v45, %v446_v46  ;;  %v1484_v45 = vld [vmem:[#allocation11 + $0x30] sm:$0xf]  ;;  %v1724_v46 = vld [vmem:[#allocation11 + $0x34] sm:$0xf0] }
 0x133   :  { %v465_v56 = vmax.f32 %v460_v51, 0.0  ;;  %v1532_v51 = vld [vmem:[#allocation11 + $0x90] sm:$0xf] }
 0x134   :  { %v417_v47 = vpop.f32.mrf.mxu2 }
 0x135   :  { %v431_v49 = vpop.f32.mrf.mxu3  ;;  %v418_v54 = vadd.f32 %v417_v47, %v244_v48  ;;  %v1723_v47 = vld [vmem:[#allocation11 + $0x34] sm:$0xf] }
 0x136   :  { %v447_v50 = vpop.f32.mrf.mxu0 }
 0x137   :  { %v448_v52 = vadd.f32 %v447_v50, %v245_v44  ;;  %v461_v53 = vpop.f32.mrf.mxu1  ;;  %v432_v59 = vadd.f32 %v431_v49, %v418_v54  ;;  %v1545_v44 = vor.u32 %v1737_v41, %v1542_v43  ;;  %v1486_v49 = vld [vmem:[#allocation11 + $0x38] sm:$0xf0] }
 0x138   :  { %v1489_v50 = vor.u32 %v1723_v47, %v1486_v49  ;;  %v1761_v47 = vld [vmem:[#allocation13 + $0x60] sm:$0xff]  ;;  %v1760_v49 = vld [vmem:[#allocation13 + $0x58] sm:$0xff] }
 0x139   :  { %v462_v55 = vadd.f32 %v461_v53, %v448_v52  ;;  %v464_v0 = vmax.f32 %v432_v59, 0.0  ;;  %975 = vmatpush.bf16.msrb.mxu1 %v1545_v44  ;;  %v1736_v52 = vld [vmem:[#allocation11 + $0x94] sm:$0xf0]  ;;  %v1735_v53 = vld [vmem:[#allocation11 + $0x94] sm:$0xf] }
 0x13a   :  { %v1533_v54 = vor.u32 %v1736_v52, %v1532_v51  ;;  %960 = vmatpush.bf16.msrb.mxu0 %v1489_v50  ;;  %v1721_v59 = vld [vmem:[#allocation11 + $0x24] sm:$0xf]  ;;  %v1759_v51 = vld [vmem:[#allocation13 + $0x50] sm:$0xff]  ;;  %v1752_v52 = vld [vmem:[#allocation13 + $0x18] sm:$0xff] }
 0x13b   :  { %v467_v57 = vmax.f32 %v462_v55, 0.0  ;;  %v1534_v55 = vld [vmem:[#allocation11 + $0x98] sm:$0xf0]  ;;  %v1753_v50 = vld [vmem:[#allocation13 + $0x20] sm:$0xff] }
 0x13c   :  { %v419_v58 = vpop.f32.mrf.mxu2  ;;  %948 = vmatpush.bf16.msra.mxu3 %v1533_v54  ;;  %v1751_v54 = vld [vmem:[#allocation13 + $0x10] sm:$0xff] }
 0x13d   :  { %v469_v60 = vpack.c.bf16 %v467_v57, %v465_v56  ;;  %v420_v61 = vadd.f32 %v419_v58, %v244_v48  ;;  %v433_v62 = vpop.f32.mrf.mxu3  ;;  %v1485_v48 = vor.u32 %v1724_v46, %v1484_v45  ;;  %v1537_v56 = vor.u32 %v1735_v53, %v1534_v55  ;;  %v1476_v57 = vld [vmem:[#allocation11 + $0x20] sm:$0xf]  ;;  %v1722_v58 = vld [vmem:[#allocation11 + $0x24] sm:$0xf0]  ;;  %v1755_v46 = vld [vmem:[#allocation13 + $0x30] sm:$0xff] }
 0x13e   :  { %v1762_v45 = vld [vmem:[#allocation13 + $0x68] sm:$0xff]  ;;  %v1757_v55 = vld [vmem:[#allocation13 + $0x40] sm:$0xff] }
 0x13f   :  { %v434_v63 = vadd.f32 %v433_v62, %v420_v61  ;;  %690 = vmatmul.bf16.vlgmr.msrb.gmra.mxu3 %v469_v60  ;;  %718 = vmatmul.bf16.vlgmr.msra.gmra.mxu1 %v469_v60  ;;  %v1477_v60 = vor.u32 %v1722_v58, %v1476_v57  ;;  %v1478_v61 = vld [vmem:[#allocation11 + $0x28] sm:$0xf0]  ;;  %v1749_v57 = vld [vmem:[#allocation13] sm:$0xff] }
 0x140   :  { %932 = vmatpush.bf16.msra.mxu2 %v1485_v48  ;;  %976 = vmatpush.bf16.msrb.mxu1 %v1537_v56  ;;  %v1481_v62 = vor.u32 %v1721_v59, %v1478_v61  ;;  %v1754_v48 = vld [vmem:[#allocation13 + $0x28] sm:$0xff]  ;;  %v762_v58 = vld [vmem:[%s2132_s8] sm:$0x3] }
 0x141   :  { %v466_v1 = vmax.f32 %v434_v63, 0.0  ;;  %v1524_v63 = vld [vmem:[#allocation11 + $0x80] sm:$0xf]  ;;  %v1758_v53 = vld [vmem:[#allocation13 + $0x48] sm:$0xff]  ;;  %v765_v61 = vperm.slane %v762_v58, 1 }
 0x142   :  { %961 = vmatpush.bf16.msrb.mxu0 %v1481_v62  ;;  %v1750_v56 = vld [vmem:[#allocation13 + $0x8] sm:$0xff] }
 0x143   :  { %v468_v2 = vpack.c.bf16 %v466_v1, %v464_v0  ;;  %v1734_v0 = vld [vmem:[#allocation11 + $0x84] sm:$0xf0]  ;;  %v1733_v1 = vld [vmem:[#allocation11 + $0x84] sm:$0xf] }
 0x144   :  { %933 = vmatpush.bf16.msra.mxu2 %v1477_v60  ;;  %v1529_v4 = vor.u32 %v1733_v1, %v1526_v3  ;;  %v764_v1 = vperm.slane %v762_v58, 0 }
 0x145   :  { %676 = vmatmul.bf16.vlgmr.msrb.gmra.mxu2 %v468_v2  ;;  %704 = vmatmul.bf16.vlgmr.msra.gmra.mxu0 %v468_v2  ;;  %v1525_v2 = vor.u32 %v1734_v0, %v1524_v63 }
 0x146   :  { %977 = vmatpush.bf16.msrb.mxu1 %v1529_v4  ;;  %962 = vmatpush.bf16.msrb.mxu0 %v1473_v10 }
 0x147   :  { %949 = vmatpush.bf16.msra.mxu3 %v1525_v2 }
 0x148   :  { %934 = vmatpush.bf16.msra.mxu2 %v1469_v8 }
 0x14a   :  { %963 = vmatpush.bf16.msrb.mxu0 %v1465_v16 }
 0x14b   :  { %1136 = vmatpush.bf16.msrb.mxu3 %v1764_v17 }
 0x14c   :  { %935 = vmatpush.bf16.msra.mxu2 %v1461_v14 }
 0x14f   :  { %1137 = vmatpush.bf16.msrb.mxu3 %v1763_v19  ;;  %v1782_v19 = vld [vmem:[%s2134_s10] ss:$0 sm:$0xff]  ;;  %s2004_s10 = smov [#allocation14]  }
 0x150   :  { %1122 = vmatpush.bf16.msrb.mxu2 %v1756_v18  ;;  %s1170_s14 = sshll.u32 %s2004_s10, 4  ;;  %s1171_s14 = int_to_ptr.vmem [resolvable:$true] %s1170_s14 }
 0x153   :  { %1138 = vmatpush.bf16.msrb.mxu3 %v1762_v45 }
 0x154   :  { %1123 = vmatpush.bf16.msrb.mxu2 %v1755_v46 }
 0x157   :  { %1139 = vmatpush.bf16.msrb.mxu3 %v1761_v47 }
 0x158   :  { %1124 = vmatpush.bf16.msrb.mxu2 %v1754_v48 }
 0x15b   :  { %1140 = vmatpush.bf16.msrb.mxu3 %v1760_v49 }
 0x15c   :  { %1125 = vmatpush.bf16.msrb.mxu2 %v1753_v50 }
 0x15f   :  { %1141 = vmatpush.bf16.msrb.mxu3 %v1759_v51 }
 0x160   :  { %1126 = vmatpush.bf16.msrb.mxu2 %v1752_v52 }
 0x163   :  { %1142 = vmatpush.bf16.msrb.mxu3 %v1758_v53 }
 0x164   :  { %1127 = vmatpush.bf16.msrb.mxu2 %v1751_v54 }
 0x167   :  { %1143 = vmatpush.bf16.msrb.mxu3 %v1757_v55 }
 0x168   :  { %1128 = vmatpush.bf16.msrb.mxu2 %v1750_v56 }
 0x16c   :  { %1129 = vmatpush.bf16.msrb.mxu2 %v1749_v57 }
 0x1bc   :  { %v719_v21 = vpop.f32.mrf.mxu1 }
 0x1c2   :  { %v705_v22 = vpop.f32.mrf.mxu0  ;;  %v691_v25 = vpop.f32.mrf.mxu3 }
 0x1c3   :  { %v706_v24 = vadd.f32 %v705_v22, %v505_v23 }
 0x1c4   :  { %v721_v31 = vpop.f32.mrf.mxu1 }
 0x1c5   :  { %v720_v29 = vadd.f32 %v719_v21, %v706_v24 }
 0x1c7   :  { %v725_v34 = vmax.f32 %v720_v29, 0.0 }
 0x1c8   :  { %v677_v26 = vpop.f32.mrf.mxu2 }
 0x1c9   :  { %v678_v32 = vadd.f32 %v677_v26, %v504_v27 }
 0x1ca   :  { %v707_v28 = vpop.f32.mrf.mxu0  ;;  %v693_v40 = vpop.f32.mrf.mxu3 }
 0x1cb   :  { %v708_v30 = vadd.f32 %v707_v28, %v505_v23  ;;  %v692_v37 = vadd.f32 %v691_v25, %v678_v32 }
 0x1cd   :  { %v722_v33 = vadd.f32 %v721_v31, %v708_v30  ;;  %v724_v42 = vmax.f32 %v692_v37, 0.0 }
 0x1cf   :  { %v727_v35 = vmax.f32 %v722_v33, 0.0 }
 0x1d0   :  { %v679_v36 = vpop.f32.mrf.mxu2 }
 0x1d1   :  { %v729_v38 = vpack.c.bf16 %v727_v35, %v725_v34  ;;  %v680_v39 = vadd.f32 %v679_v36, %v504_v27 }
 0x1d3   :  { %v694_v41 = vadd.f32 %v693_v40, %v680_v39  ;;  %950 = vmatmul.bf16.vlgmr.msra.gmra.mxu3 %v729_v38  ;;  %978 = vmatmul.bf16.vlgmr.msrb.gmra.mxu1 %v729_v38 }
 0x1d5   :  { %v726_v43 = vmax.f32 %v694_v41, 0.0 }
 0x1d7   :  { %v728_v44 = vpack.c.bf16 %v726_v43, %v724_v42 }
 0x1d9   :  { %936 = vmatmul.bf16.vlgmr.msra.gmra.mxu2 %v728_v44  ;;  %964 = vmatmul.bf16.vlgmr.msrb.gmra.mxu0 %v728_v44 }
 0x250   :  { %v979_v59 = vpop.f32.mrf.mxu1 }
 0x256   :  { %v965_v60 = vpop.f32.mrf.mxu0  ;;  %v951_v63 = vpop.f32.mrf.mxu3 }
 0x257   :  { %v966_v62 = vadd.f32 %v965_v60, %v765_v61 }
 0x258   :  { %v981_v5 = vpop.f32.mrf.mxu1 }
 0x259   :  { %v980_v3 = vadd.f32 %v979_v59, %v966_v62 }
 0x25b   :  { %v985_v8 = vmax.f32 %v980_v3, 0.0 }
 0x25c   :  { %v937_v0 = vpop.f32.mrf.mxu2 }
 0x25d   :  { %v938_v6 = vadd.f32 %v937_v0, %v764_v1 }
 0x25e   :  { %v967_v2 = vpop.f32.mrf.mxu0  ;;  %v953_v14 = vpop.f32.mrf.mxu3 }
 0x25f   :  { %v968_v4 = vadd.f32 %v967_v2, %v765_v61  ;;  %v952_v11 = vadd.f32 %v951_v63, %v938_v6 }
 0x261   :  { %v982_v7 = vadd.f32 %v981_v5, %v968_v4  ;;  %v984_v16 = vmax.f32 %v952_v11, 0.0 }
 0x263   :  { %v987_v9 = vmax.f32 %v982_v7, 0.0 }
 0x264   :  { %v939_v10 = vpop.f32.mrf.mxu2 }
 0x265   :  { %v989_v12 = vpack.c.bf16 %v987_v9, %v985_v8  ;;  %v940_v13 = vadd.f32 %v939_v10, %v764_v1 }
 0x267   :  { %v954_v15 = vadd.f32 %v953_v14, %v940_v13  ;;  %1144 = vmatmul.bf16.vlgmr.msrb.gmra.mxu3 %v989_v12 }
 0x269   :  { %v986_v17 = vmax.f32 %v954_v15, 0.0 }
 0x26b   :  { %v988_v18 = vpack.c.bf16 %v986_v17, %v984_v16 }
 0x26d   :  { %1130 = vmatmul.bf16.vlgmr.msrb.gmra.mxu2 %v988_v18 }
 0x2ea   :  { %v1145_v20 = vpop.f32.mrf.mxu3 }
 0x2f0   :  { %v1131_v21 = vpop.f32.mrf.mxu2 }
 0x2f1   :  { %v1132_v22 = vadd.f32 %v1782_v19, %v1131_v21 }
 0x2f2   :  { %v1147_v28 = vpop.f32.mrf.mxu3 }
 0x2f3   :  { %v1146_v23 = vadd.f32 %v1145_v20, %v1132_v22 }
 0x2f5   :  { %v1150_v24 = vsub.f32 0.0, %v1146_v23 }
 0x2f7   :  { %v1152_v25 = vmul.f32 1.442695, %v1150_v24 }
 0x2f8   :  { %v1133_v26 = vpop.f32.mrf.mxu2 }
 0x2f9   :  { %v1134_v27 = vadd.f32 %v1782_v19, %v1133_v26  ;;  %1783 = vpow2.f32 %v1152_v25 }
 0x2fb   :  { %v1148_v29 = vadd.f32 %v1147_v28, %v1134_v27 }
 0x2fd   :  { %v1151_v30 = vsub.f32 0.0, %v1148_v29 }
 0x2ff   :  { %v1154_v31 = vmul.f32 1.442695, %v1151_v30  ;;  %v1784_v32 = vpop.eup %1783 }
 0x300   :  { %v1156_v33 = vadd.f32 1.0, %v1784_v32 }
 0x301   :  { %1785 = vpow2.f32 %v1154_v31 }
 0x302   :  { %1787 = vrcp.f32 %v1156_v33 }
 0x307   :  { %v1786_v34 = vpop.eup %1785 }
 0x308   :  { %v1157_v35 = vadd.f32 1.0, %v1786_v34  ;;  %v1788_v36 = vpop.eup %1787 }
 0x309   :  { %v1160_v38 = vmul.f32 2.0, %v1788_v36 }
 0x30a   :  { %1789 = vrcp.f32 %v1157_v35 }
 0x310   :  { %v1790_v37 = vpop.eup %1789 }
 0x311   :  { %v1161_v39 = vmul.f32 2.0, %v1790_v37 }
 0x313   :  { %v1768_v40 = vpack.c.bf16 %v1161_v39, %v1160_v38 }
 0x315   :  { %1769 = vst [vmem:[#allocation14] sm:$0xff] %v1768_v40  }
 0x316   :  { %1178 = dma.vmem_to_hbm [thread:$0]  %s1171_s14, 128, %s1173_s7, [#allocation4], %s1999_s17, %s1999_s17, %s2000_s18  }
 0x317   :  { %1991 = dma.done.wait [#allocation4], 128  }
 0x318   :  { %1992 = vsyncadd [#allocation4], 4294967168 }
 0x319   :  { %1183 = vsyncpa [#allocation3], 1 }
 0x31a   :  { %1184 = vsyncpa [#allocation6], 1 }
 0x31b   :  { %1185 = vsyncpa [#allocation9], 1 }
 0x31c   :  { %1186 = vsyncpa [#allocation12], 1 }
 0x31d   :  { %1187 = vsyncpa [#allocation4], 1 }

// kernel: tpu_custom_call.1
= control target key start
LH: loop header
LB: loop body
LE: loop exit
PB: predicated region body
PF: predicated region fallthrough
CT: control target
= control target key end

     0   :  { %16 = vsyncpa [#allocation3], 0  ;;  %s2124_s0 = inlined_call_operand.hbm [shape: bf16[16,16], index: 0, kind: input, shape index: {}]   ;;  %s2125_s1 = inlined_call_operand.hbm [shape: bf16[16,256], index: 1, kind: input, shape index: {}]   ;;  %s2126_s2 = inlined_call_operand.hbm [shape: f32[1,256], index: 2, kind: input, shape index: {}]   ;;  %s2127_s3 = inlined_call_operand.hbm [shape: bf16[256,256], index: 3, kind: input, shape index: {}]   ;;  %s2128_s4 = inlined_call_operand.vmem [shape: f32[1,256], index: 4, kind: input, shape index: {}]   ;;  %s2129_s5 = inlined_call_operand.hbm [shape: bf16[256,256], index: 5, kind: input, shape index: {}]   ;;  %s2130_s6 = inlined_call_operand.vmem [shape: f32[1,256], index: 6, kind: input, shape index: {}]   ;;  %s2131_s7 = inlined_call_operand.hbm [shape: bf16[256,256], index: 7, kind: input, shape index: {}]   ;;  %s2132_s8 = inlined_call_operand.vmem [shape: f32[1,256], index: 8, kind: input, shape index: {}]   ;;  %s2133_s9 = inlined_call_operand.hbm [shape: bf16[256,128], index: 9, kind: input, shape index: {}]   ;;  %s2134_s10 = inlined_call_operand.vmem [shape: f32[1,128], index: 10, kind: input, shape index: {}]   ;;  %s2135_s11 = inlined_call_operand.hbm [shape: bf16[16,128], index: 11, kind: output, shape index: {}]  }
   0x1   :  { %17 = vsyncpa [#allocation6], 0 }
   0x2   :  { %18 = vsyncpa [#allocation9], 0 }
   0x3   :  { %19 = vsyncpa [#allocation12], 0  ;;  %s38_s19 = sshll.u32 %s2125_s1, 4  ;;  %s39_s19 = int_to_ptr.hbm [resolvable:$true] %s38_s19 }
   0x4   :  { %20 = vsyncpa [#allocation4], 0  ;;  %s1993_s20 = smov [#allocation5]   ;;  %s62_s24 = sshll.u32 %s2127_s3, 4  ;;  %s63_s24 = int_to_ptr.hbm [resolvable:$true] %s62_s24 }
   0x5   :  { %s40_s21 = sshll.u32 %s1993_s20, 4  ;;  %s1994_s25 = smov 128   ;;  %s41_s21 = int_to_ptr.vmem [resolvable:$true] %s40_s21 }
   0x6   :  { %s1995_s26 = smov 8   ;;  %s1996_s27 = smov [#allocation8]  }
   0x7   :  { %46 = dma.hbm_to_vmem [thread:$0]  %s39_s19, 256, %s41_s21, [#allocation6], %s1994_s25, %s1994_s25, %s1995_s26  }
   0x8   :  { %s64_s28 = sshll.u32 %s1996_s27, 4  ;;  %s92_s30 = sshll.u32 %s2131_s7, 4  ;;  %s65_s28 = int_to_ptr.vmem [resolvable:$true] %s64_s28  ;;  %s93_s30 = int_to_ptr.hbm [resolvable:$true] %s92_s30 }
   0x9   :  { %70 = dma.hbm_to_vmem [thread:$0]  %s63_s24, 4096, %s65_s28, [#allocation9], %s1994_s25, %s1994_s25, %s1995_s26  }
   0xa   :  { %s25_s13 = sshll.u32 %s2124_s0, 4  ;;  %s1997_s14 = smov [#allocation11]   ;;  %s26_s13 = int_to_ptr.hbm [resolvable:$true] %s25_s13 }
   0xb   :  { %s94_s15 = sshll.u32 %s1997_s14, 4  ;;  %s1998_s16 = smov [#allocation2]   ;;  %s95_s15 = int_to_ptr.vmem [resolvable:$true] %s94_s15 }
   0xc   :  { %100 = dma.hbm_to_vmem [thread:$0]  %s93_s30, 4096, %s95_s15, [#allocation12], %s1994_s25, %s1994_s25, %s1995_s26  }
   0xd   :  { %s27_s7 = sshll.u32 %s1998_s16, 4  ;;  %s1999_s17 = smov 64   ;;  %s28_s7 = int_to_ptr.vmem [resolvable:$true] %s27_s7 }
   0xe   :  { %s2000_s18 = smov 4   ;;  %s52_s0 = sshll.u32 %s2126_s2, 4  ;;  %s53_s0 = int_to_ptr.hbm [resolvable:$true] %s52_s0 }
   0xf   :  { %33 = dma.hbm_to_vmem [thread:$0]  %s26_s13, 128, %s28_s7, [#allocation3], %s1999_s17, %s1999_s17, %s2000_s18  }
  0x10   :  { %s2001_s21 = smov [#allocation7]   ;;  %s77_s27 = sshll.u32 %s2129_s5, 4  ;;  %s78_s27 = int_to_ptr.hbm [resolvable:$true] %s77_s27 }
  0x11   :  { %s54_s22 = sshll.u32 %s2001_s21, 4  ;;  %s2002_s28 = smov [#allocation10]   ;;  %s55_s22 = int_to_ptr.vmem [resolvable:$true] %s54_s22 }
  0x12   :  { %57 = dma.hbm_to_vmem [thread:$0]  %s53_s0, 32, %s55_s22, [#allocation6]  }
  0x13   :  { %s79_s29 = sshll.u32 %s2002_s28, 4  ;;  %s107_s3 = sshll.u32 %s2133_s9, 4  ;;  %s80_s29 = int_to_ptr.vmem [resolvable:$true] %s79_s29  ;;  %s108_s3 = int_to_ptr.hbm [resolvable:$true] %s107_s3 }
  0x14   :  { %85 = dma.hbm_to_vmem [thread:$0]  %s78_s27, 4096, %s80_s29, [#allocation9], %s1994_s25, %s1994_s25, %s1995_s26  }
  0x15   :  { %s2003_s2 = smov [#allocation13]  }
  0x16   :  { %s109_s12 = sshll.u32 %s2003_s2, 4  ;;  %s110_s12 = int_to_ptr.vmem [resolvable:$true] %s109_s12 }
  0x17   :  { %115 = dma.hbm_to_vmem [thread:$0]  %s108_s3, 2048, %s110_s12, [#allocation12], %s1999_s17, %s1999_s17, %s2000_s18  }
  0x18   :  { %1983 = dma.done.wait [#allocation3], 128  }
  0x19   :  { %1984 = vsyncadd [#allocation3], 4294967168 }
  0x1a   :  { %1985 = dma.done.wait [#allocation6], 288  }
  0x1b   :  { %1986 = vsyncadd [#allocation6], 4294967008 }
  0x1c   :  { %1987 = dma.done.wait [#allocation9], 8192  }
  0x1d   :  { %1988 = vsyncadd [#allocation9], 4294959104 }
  0x1e   :  { %1989 = dma.done.wait [#allocation12], 6144  }
  0x1f   :  { %1990 = vsyncadd [#allocation12], 4294961152  ;;  %v1194_v0 = vld [vmem:[#allocation5] sm:$0xf]  ;;  %v1652_v1 = vld [vmem:[#allocation5 + $0x4] sm:$0xf0] }
  0x20   :  { %v1651_v2 = vld [vmem:[#allocation5 + $0x4] sm:$0xf]  ;;  %v1195_v3 = vor.u32 %v1652_v1, %v1194_v0  ;;  %v1196_v4 = vld [vmem:[#allocation5 + $0x8] sm:$0xf0]  ;;  %v1650_v5 = vld [vmem:[#allocation2] sm:$0xff]  ;;  %vm172_vm0 = vcmask 130048  }
  0x21   :  { %v1260_v6 = vld [vmem:[#allocation8 + $0x70] sm:$0xf]  ;;  %v1199_v7 = vor.u32 %v1651_v2, %v1196_v4  ;;  %v1668_v8 = vld [vmem:[#allocation8 + $0x74] sm:$0xf0]  ;;  %v1667_v13 = vld [vmem:[#allocation8 + $0x74] sm:$0xf] }
  0x22   :  { %v1324_v9 = vld [vmem:[#allocation8 + $0xf0] sm:$0xf]  ;;  %v1684_v10 = vld [vmem:[#allocation8 + $0xf4] sm:$0xf0]  ;;  %183 = vmatpush.bf16.msra.mxu0 %v1195_v3  ;;  %v1261_v11 = vor.u32 %v1668_v8, %v1260_v6  ;;  %v1262_v14 = vld [vmem:[#allocation8 + $0x78] sm:$0xf0] }
  0x23   :  { %v1325_v12 = vor.u32 %v1684_v10, %v1324_v9  ;;  %v1683_v15 = vld [vmem:[#allocation8 + $0xf4] sm:$0xf]  ;;  %197 = vmatpush.bf16.msra.mxu1 %v1199_v7  ;;  %v1265_v16 = vor.u32 %v1667_v13, %v1262_v14  ;;  %v1326_v17 = vld [vmem:[#allocation8 + $0xf8] sm:$0xf0]  ;;  %v1252_v18 = vld [vmem:[#allocation8 + $0x60] sm:$0xf] }
  0x24   :  { %v1666_v19 = vld [vmem:[#allocation8 + $0x64] sm:$0xf0]  ;;  %408 = vmatpush.bf16.msra.mxu2 %v1261_v11  ;;  %v1329_v20 = vor.u32 %v1683_v15, %v1326_v17  ;;  %v1316_v22 = vld [vmem:[#allocation8 + $0xe0] sm:$0xf]  ;;  %v1665_v24 = vld [vmem:[#allocation8 + $0x64] sm:$0xf] }
  0x25   :  { %422 = vmatpush.bf16.msra.mxu3 %v1325_v12  ;;  %v1253_v21 = vor.u32 %v1666_v19, %v1252_v18  ;;  %v1682_v23 = vld [vmem:[#allocation8 + $0xe4] sm:$0xf0]  ;;  %1200 = vmatmul.msk.bf16.vlgmr.msra.gmra.mxu0 %vm172_vm0, %v1650_v5  ;;  %v1254_v26 = vld [vmem:[#allocation8 + $0x68] sm:$0xf0]  ;;  %v1681_v27 = vld [vmem:[#allocation8 + $0xe4] sm:$0xf] }
  0x26   :  { %v1317_v25 = vor.u32 %v1682_v23, %v1316_v22  ;;  %v1318_v28 = vld [vmem:[#allocation8 + $0xe8] sm:$0xf0]  ;;  %1201 = vmatmul.msk.bf16.vlgmr.msra.gmra.mxu1 %vm172_vm0, %v1650_v5  ;;  %436 = vmatpush.bf16.msrb.mxu0 %v1265_v16  ;;  %v1257_v29 = vor.u32 %v1665_v24, %v1254_v26  ;;  %v1244_v30 = vld [vmem:[#allocation8 + $0x50] sm:$0xf]  ;;  %v1664_v31 = vld [vmem:[#allocation8 + $0x54] sm:$0xf0] }
  0x27   :  { %v1308_v32 = vld [vmem:[#allocation8 + $0xd0] sm:$0xf]  ;;  %450 = vmatpush.bf16.msrb.mxu1 %v1329_v20  ;;  %v1321_v33 = vor.u32 %v1681_v27, %v1318_v28  ;;  %v1680_v34 = vld [vmem:[#allocation8 + $0xd4] sm:$0xf0]  ;;  %v1663_v35 = vld [vmem:[#allocation8 + $0x54] sm:$0xf]  ;;  %v1245_v37 = vor.u32 %v1664_v31, %v1244_v30 }
  0x28   :  { %v1246_v36 = vld [vmem:[#allocation8 + $0x58] sm:$0xf0]  ;;  %409 = vmatpush.bf16.msra.mxu2 %v1253_v21  ;;  %v1309_v38 = vor.u32 %v1680_v34, %v1308_v32  ;;  %v1679_v39 = vld [vmem:[#allocation8 + $0xd4] sm:$0xf]  ;;  %v1236_v41 = vld [vmem:[#allocation8 + $0x40] sm:$0xf] }
  0x29   :  { %423 = vmatpush.bf16.msra.mxu3 %v1317_v25  ;;  %v1310_v40 = vld [vmem:[#allocation8 + $0xd8] sm:$0xf0]  ;;  %v1662_v42 = vld [vmem:[#allocation8 + $0x44] sm:$0xf0]  ;;  %v1300_v43 = vld [vmem:[#allocation8 + $0xc0] sm:$0xf]  ;;  %v1249_v45 = vor.u32 %v1663_v35, %v1246_v36 }
  0x2a   :  { %v1678_v44 = vld [vmem:[#allocation8 + $0xc4] sm:$0xf0]  ;;  %437 = vmatpush.bf16.msrb.mxu0 %v1257_v29  ;;  %v1313_v46 = vor.u32 %v1679_v39, %v1310_v40  ;;  %v1661_v47 = vld [vmem:[#allocation8 + $0x44] sm:$0xf]  ;;  %v1238_v48 = vld [vmem:[#allocation8 + $0x48] sm:$0xf0]  ;;  %v1237_v49 = vor.u32 %v1662_v42, %v1236_v41 }
  0x2b   :  { %451 = vmatpush.bf16.msrb.mxu1 %v1321_v33  ;;  %v1301_v50 = vor.u32 %v1678_v44, %v1300_v43  ;;  %v1677_v51 = vld [vmem:[#allocation8 + $0xc4] sm:$0xf]  ;;  %v1302_v52 = vld [vmem:[#allocation8 + $0xc8] sm:$0xf0]  ;;  %v1241_v53 = vor.u32 %v1661_v47, %v1238_v48  ;;  %v1228_v55 = vld [vmem:[#allocation8 + $0x30] sm:$0xf] }
  0x2c   :  { %410 = vmatpush.bf16.msra.mxu2 %v1245_v37  ;;  %v1305_v54 = vor.u32 %v1677_v51, %v1302_v52  ;;  %v1660_v56 = vld [vmem:[#allocation8 + $0x34] sm:$0xf0]  ;;  %v1292_v57 = vld [vmem:[#allocation8 + $0xb0] sm:$0xf]  ;;  %v1659_v60 = vld [vmem:[#allocation8 + $0x34] sm:$0xf] }
  0x2d   :  { %424 = vmatpush.bf16.msra.mxu3 %v1309_v38  ;;  %v1229_v58 = vor.u32 %v1660_v56, %v1228_v55  ;;  %v1676_v59 = vld [vmem:[#allocation8 + $0xb4] sm:$0xf0]  ;;  %v1230_v61 = vld [vmem:[#allocation8 + $0x38] sm:$0xf0]  ;;  %v1675_v0 = vld [vmem:[#allocation8 + $0xb4] sm:$0xf] }
  0x2e   :  { %438 = vmatpush.bf16.msrb.mxu0 %v1249_v45  ;;  %v1293_v62 = vor.u32 %v1676_v59, %v1292_v57  ;;  %v1233_v63 = vor.u32 %v1659_v60, %v1230_v61  ;;  %v1294_v1 = vld [vmem:[#allocation8 + $0xb8] sm:$0xf0]  ;;  %v1220_v3 = vld [vmem:[#allocation8 + $0x20] sm:$0xf]  ;;  %v1658_v4 = vld [vmem:[#allocation8 + $0x24] sm:$0xf0] }
  0x2f   :  { %452 = vmatpush.bf16.msrb.mxu1 %v1313_v46  ;;  %v1297_v2 = vor.u32 %v1675_v0, %v1294_v1  ;;  %v1221_v5 = vor.u32 %v1658_v4, %v1220_v3  ;;  %v1284_v6 = vld [vmem:[#allocation8 + $0xa0] sm:$0xf]  ;;  %v1674_v7 = vld [vmem:[#allocation8 + $0xa4] sm:$0xf0]  ;;  %v1657_v8 = vld [vmem:[#allocation8 + $0x24] sm:$0xf] }
  0x30   :  { %411 = vmatpush.bf16.msra.mxu2 %v1237_v49  ;;  %v1285_v9 = vor.u32 %v1674_v7, %v1284_v6  ;;  %v1222_v10 = vld [vmem:[#allocation8 + $0x28] sm:$0xf0]  ;;  %v1673_v11 = vld [vmem:[#allocation8 + $0xa4] sm:$0xf]  ;;  %v1212_v15 = vld [vmem:[#allocation8 + $0x10] sm:$0xf] }
  0x31   :  { %425 = vmatpush.bf16.msra.mxu3 %v1301_v50  ;;  %v1286_v12 = vld [vmem:[#allocation8 + $0xa8] sm:$0xf0]  ;;  %v1225_v13 = vor.u32 %v1657_v8, %v1222_v10  ;;  %v1656_v16 = vld [vmem:[#allocation8 + $0x14] sm:$0xf0]  ;;  %v1276_v17 = vld [vmem:[#allocation8 + $0x90] sm:$0xf] }
  0x32   :  { %439 = vmatpush.bf16.msrb.mxu0 %v1241_v53  ;;  %v1289_v14 = vor.u32 %v1673_v11, %v1286_v12  ;;  %v1213_v18 = vor.u32 %v1656_v16, %v1212_v15  ;;  %v1672_v19 = vld [vmem:[#allocation8 + $0x94] sm:$0xf0]  ;;  %v1655_v20 = vld [vmem:[#allocation8 + $0x14] sm:$0xf]  ;;  %v1214_v21 = vld [vmem:[#allocation8 + $0x18] sm:$0xf0] }
  0x33   :  { %453 = vmatpush.bf16.msrb.mxu1 %v1305_v54  ;;  %v1277_v22 = vor.u32 %v1672_v19, %v1276_v17  ;;  %v1217_v23 = vor.u32 %v1655_v20, %v1214_v21  ;;  %v1671_v24 = vld [vmem:[#allocation8 + $0x94] sm:$0xf]  ;;  %v1278_v25 = vld [vmem:[#allocation8 + $0x98] sm:$0xf0]  ;;  %v1204_v27 = vld [vmem:[#allocation8] sm:$0xf] }
  0x34   :  { %412 = vmatpush.bf16.msra.mxu2 %v1229_v58  ;;  %v1281_v26 = vor.u32 %v1671_v24, %v1278_v25  ;;  %v1654_v28 = vld [vmem:[#allocation8 + $0x4] sm:$0xf0]  ;;  %v1268_v29 = vld [vmem:[#allocation8 + $0x80] sm:$0xf]  ;;  %v1653_v32 = vld [vmem:[#allocation8 + $0x4] sm:$0xf] }
  0x35   :  { %426 = vmatpush.bf16.msra.mxu3 %v1293_v62  ;;  %v1205_v30 = vor.u32 %v1654_v28, %v1204_v27  ;;  %v1670_v31 = vld [vmem:[#allocation8 + $0x84] sm:$0xf0]  ;;  %v1206_v33 = vld [vmem:[#allocation8 + $0x8] sm:$0xf0]  ;;  %v1669_v36 = vld [vmem:[#allocation8 + $0x84] sm:$0xf] }
  0x36   :  { %440 = vmatpush.bf16.msrb.mxu0 %v1233_v63  ;;  %v1269_v34 = vor.u32 %v1670_v31, %v1268_v29  ;;  %v1209_v35 = vor.u32 %v1653_v32, %v1206_v33  ;;  %v1270_v37 = vld [vmem:[#allocation8 + $0x88] sm:$0xf0]  ;;  %v1452_v39 = vld [vmem:[#allocation10 + $0xf0] sm:$0xf]  ;;  %v1716_v40 = vld [vmem:[#allocation10 + $0xf4] sm:$0xf0] }
  0x37   :  { %454 = vmatpush.bf16.msrb.mxu1 %v1297_v2  ;;  %v1273_v38 = vor.u32 %v1669_v36, %v1270_v37  ;;  %v1715_v41 = vld [vmem:[#allocation10 + $0xf4] sm:$0xf]  ;;  %v1453_v42 = vor.u32 %v1716_v40, %v1452_v39  ;;  %v1454_v43 = vld [vmem:[#allocation10 + $0xf8] sm:$0xf0]  ;;  %v1444_v44 = vld [vmem:[#allocation10 + $0xe0] sm:$0xf] }
  0x38   :  { %413 = vmatpush.bf16.msra.mxu2 %v1221_v5  ;;  %v1714_v45 = vld [vmem:[#allocation10 + $0xe4] sm:$0xf0]  ;;  %v1457_v46 = vor.u32 %v1715_v41, %v1454_v43  ;;  %v1713_v47 = vld [vmem:[#allocation10 + $0xe4] sm:$0xf]  ;;  %v1446_v48 = vld [vmem:[#allocation10 + $0xe8] sm:$0xf0] }
  0x39   :  { %427 = vmatpush.bf16.msra.mxu3 %v1285_v9  ;;  %v1388_v49 = vld [vmem:[#allocation10 + $0x70] sm:$0xf]  ;;  %v1445_v50 = vor.u32 %v1714_v45, %v1444_v44  ;;  %v1700_v51 = vld [vmem:[#allocation10 + $0x74] sm:$0xf0]  ;;  %v1699_v52 = vld [vmem:[#allocation10 + $0x74] sm:$0xf]  ;;  %v1449_v54 = vor.u32 %v1713_v47, %v1446_v48 }
  0x3a   :  { %441 = vmatpush.bf16.msrb.mxu0 %v1225_v13  ;;  %v1390_v53 = vld [vmem:[#allocation10 + $0x78] sm:$0xf0]  ;;  %v1389_v55 = vor.u32 %v1700_v51, %v1388_v49  ;;  %v1436_v57 = vld [vmem:[#allocation10 + $0xd0] sm:$0xf]  ;;  %v1712_v58 = vld [vmem:[#allocation10 + $0xd4] sm:$0xf0] }
  0x3b   :  { %455 = vmatpush.bf16.msrb.mxu1 %v1289_v14  ;;  %v1393_v56 = vor.u32 %v1699_v52, %v1390_v53  ;;  %v1711_v59 = vld [vmem:[#allocation10 + $0xd4] sm:$0xf]  ;;  %v1438_v60 = vld [vmem:[#allocation10 + $0xd8] sm:$0xf0]  ;;  %v1380_v61 = vld [vmem:[#allocation10 + $0x60] sm:$0xf]  ;;  %v1437_v2 = vor.u32 %v1712_v58, %v1436_v57 }
  0x3c   :  { %414 = vmatpush.bf16.msra.mxu2 %v1213_v18  ;;  %v1698_v62 = vld [vmem:[#allocation10 + $0x64] sm:$0xf0]  ;;  %v1697_v0 = vld [vmem:[#allocation10 + $0x64] sm:$0xf]  ;;  %v1382_v1 = vld [vmem:[#allocation10 + $0x68] sm:$0xf0]  ;;  %v1441_v4 = vor.u32 %v1711_v59, %v1438_v60 }
  0x3d   :  { %428 = vmatpush.bf16.msra.mxu3 %v1277_v22  ;;  %v1381_v63 = vor.u32 %v1698_v62, %v1380_v61  ;;  %v1385_v3 = vor.u32 %v1697_v0, %v1382_v1  ;;  %v1428_v5 = vld [vmem:[#allocation10 + $0xc0] sm:$0xf]  ;;  %v1710_v6 = vld [vmem:[#allocation10 + $0xc4] sm:$0xf0]  ;;  %v1709_v7 = vld [vmem:[#allocation10 + $0xc4] sm:$0xf] }
  0x3e   :  { %442 = vmatpush.bf16.msrb.mxu0 %v1217_v23  ;;  %v1430_v8 = vld [vmem:[#allocation10 + $0xc8] sm:$0xf0]  ;;  %v1429_v9 = vor.u32 %v1710_v6, %v1428_v5  ;;  %v151_v11 = vld [vmem:[#allocation7] sm:$0x3]  ;;  %v1372_v28 = vld [vmem:[#allocation10 + $0x50] sm:$0xf] }
  0x3f   :  { %456 = vmatpush.bf16.msrb.mxu1 %v1281_v26  ;;  %v1433_v10 = vor.u32 %v1709_v7, %v1430_v8  ;;  %v153_v14 = vperm.slane %v151_v11, 0  ;;  %v154_v15 = vperm.slane %v151_v11, 1  ;;  %v1696_v29 = vld [vmem:[#allocation10 + $0x54] sm:$0xf0]  ;;  %v1374_v32 = vld [vmem:[#allocation10 + $0x58] sm:$0xf0] }
  0x40   :  { %415 = vmatpush.bf16.msra.mxu2 %v1205_v30  ;;  %v1695_v30 = vld [vmem:[#allocation10 + $0x54] sm:$0xf]  ;;  %v1373_v31 = vor.u32 %v1696_v29, %v1372_v28  ;;  %v1364_v40 = vld [vmem:[#allocation10 + $0x40] sm:$0xf]  ;;  %v1694_v41 = vld [vmem:[#allocation10 + $0x44] sm:$0xf0] }
  0x41   :  { %429 = vmatpush.bf16.msra.mxu3 %v1269_v34  ;;  %v1377_v33 = vor.u32 %v1695_v30, %v1374_v32  ;;  %v1420_v34 = vld [vmem:[#allocation10 + $0xb0] sm:$0xf]  ;;  %v1707_v36 = vld [vmem:[#allocation10 + $0xb4] sm:$0xf]  ;;  %v1365_v43 = vor.u32 %v1694_v41, %v1364_v40  ;;  %v1366_v44 = vld [vmem:[#allocation10 + $0x48] sm:$0xf0] }
  0x42   :  { %443 = vmatpush.bf16.msrb.mxu0 %v1209_v35  ;;  %v1708_v35 = vld [vmem:[#allocation10 + $0xb4] sm:$0xf0]  ;;  %v1706_v47 = vld [vmem:[#allocation10 + $0xa4] sm:$0xf0]  ;;  %v1705_v48 = vld [vmem:[#allocation10 + $0xa4] sm:$0xf] }
  0x43   :  { %457 = vmatpush.bf16.msrb.mxu1 %v1273_v38  ;;  %v1421_v37 = vor.u32 %v1708_v35, %v1420_v34  ;;  %v1422_v38 = vld [vmem:[#allocation10 + $0xb8] sm:$0xf0]  ;;  %v1356_v52 = vld [vmem:[#allocation10 + $0x30] sm:$0xf]  ;;  %v1692_v53 = vld [vmem:[#allocation10 + $0x34] sm:$0xf0] }
  0x44   :  { %668 = vmatpush.bf16.msrb.mxu2 %v1389_v55  ;;  %v1425_v39 = vor.u32 %v1707_v36, %v1422_v38  ;;  %v1357_v55 = vor.u32 %v1692_v53, %v1356_v52  ;;  %v1404_v58 = vld [vmem:[#allocation10 + $0x90] sm:$0xf]  ;;  %v1704_v59 = vld [vmem:[#allocation10 + $0x94] sm:$0xf0]  ;;  %v1703_v60 = vld [vmem:[#allocation10 + $0x94] sm:$0xf] }
  0x45   :  { %682 = vmatpush.bf16.msrb.mxu3 %v1453_v42  ;;  %v1693_v42 = vld [vmem:[#allocation10 + $0x44] sm:$0xf]  ;;  %v1405_v61 = vor.u32 %v1704_v59, %v1404_v58  ;;  %v1406_v62 = vld [vmem:[#allocation10 + $0x98] sm:$0xf0]  ;;  %v1348_v0 = vld [vmem:[#allocation10 + $0x20] sm:$0xf] }
  0x46   :  { %696 = vmatpush.bf16.msra.mxu0 %v1393_v56  ;;  %v1369_v45 = vor.u32 %v1693_v42, %v1366_v44  ;;  %v1358_v56 = vld [vmem:[#allocation10 + $0x38] sm:$0xf0]  ;;  %v1690_v1 = vld [vmem:[#allocation10 + $0x24] sm:$0xf0]  ;;  %v1396_v6 = vld [vmem:[#allocation10 + $0x80] sm:$0xf] }
  0x47   :  { %710 = vmatpush.bf16.msra.mxu1 %v1457_v46  ;;  %v1412_v46 = vld [vmem:[#allocation10 + $0xa0] sm:$0xf]  ;;  %v1702_v7 = vld [vmem:[#allocation10 + $0x84] sm:$0xf0]  ;;  %v1701_v8 = vld [vmem:[#allocation10 + $0x84] sm:$0xf] }
  0x48   :  { %669 = vmatpush.bf16.msrb.mxu2 %v1381_v63  ;;  %v1413_v49 = vor.u32 %v1706_v47, %v1412_v46  ;;  %v1409_v63 = vor.u32 %v1703_v60, %v1406_v62  ;;  %v1582_v28 = vld [vmem:[#allocation11 + $0xf8] sm:$0xf0]  ;;  %v1572_v29 = vld [vmem:[#allocation11 + $0xe0] sm:$0xf]  ;;  %v1746_v30 = vld [vmem:[#allocation11 + $0xe4] sm:$0xf0] }
  0x49   :  { %683 = vmatpush.bf16.msrb.mxu3 %v1445_v50  ;;  %v1414_v50 = vld [vmem:[#allocation10 + $0xa8] sm:$0xf0]  ;;  %v1745_v32 = vld [vmem:[#allocation11 + $0xe4] sm:$0xf]  ;;  %v1516_v34 = vld [vmem:[#allocation11 + $0x70] sm:$0xf]  ;;  %v1573_v35 = vor.u32 %v1746_v30, %v1572_v29 }
  0x4a   :  { %697 = vmatpush.bf16.msra.mxu0 %v1385_v3  ;;  %v1417_v51 = vor.u32 %v1705_v48, %v1414_v50  ;;  %v1349_v3 = vor.u32 %v1690_v1, %v1348_v0  ;;  %v1732_v36 = vld [vmem:[#allocation11 + $0x74] sm:$0xf0]  ;;  %v1518_v38 = vld [vmem:[#allocation11 + $0x78] sm:$0xf0]  ;;  %v242_v42 = vld [vmem:[%s2128_s4] sm:$0x3] }
  0x4b   :  { %711 = vmatpush.bf16.msra.mxu1 %v1449_v54  ;;  %v1691_v54 = vld [vmem:[#allocation10 + $0x34] sm:$0xf]  ;;  %v1517_v40 = vor.u32 %v1732_v36, %v1516_v34  ;;  %v245_v44 = vperm.slane %v242_v42, 1  ;;  %v244_v48 = vperm.slane %v242_v42, 0  ;;  %v1726_v34 = vld [vmem:[#allocation11 + $0x44] sm:$0xf0] }
  0x4c   :  { %670 = vmatpush.bf16.msrb.mxu2 %v1373_v31  ;;  %v1361_v57 = vor.u32 %v1691_v54, %v1358_v56  ;;  %v1739_v30 = vld [vmem:[#allocation11 + $0xb4] sm:$0xf]  ;;  %s1172_s7 = sshll.u32 %s2135_s11, 4  ;;  %s1173_s7 = int_to_ptr.hbm [resolvable:$true] %s1172_s7 }
  0x4d   :  { %684 = vmatpush.bf16.msrb.mxu3 %v1437_v2  ;;  %v1689_v2 = vld [vmem:[#allocation10 + $0x24] sm:$0xf] }
  0x4e   :  { %698 = vmatpush.bf16.msra.mxu0 %v1377_v33  ;;  %v1574_v33 = vld [vmem:[#allocation11 + $0xe8] sm:$0xf0] }
  0x4f   :  { %712 = vmatpush.bf16.msra.mxu1 %v1441_v4  ;;  %v1350_v4 = vld [vmem:[#allocation10 + $0x28] sm:$0xf0] }
  0x50   :  { %671 = vmatpush.bf16.msrb.mxu2 %v1365_v43  ;;  %v1353_v5 = vor.u32 %v1689_v2, %v1350_v4  ;;  %v1744_v4 = vld [vmem:[#allocation11 + $0xd4] sm:$0xf0] }
  0x51   :  { %685 = vmatpush.bf16.msrb.mxu3 %v1429_v9  ;;  %v1397_v9 = vor.u32 %v1702_v7, %v1396_v6  ;;  %v1566_v7 = vld [vmem:[#allocation11 + $0xd8] sm:$0xf0] }
  0x52   :  { %699 = vmatpush.bf16.msra.mxu0 %v1369_v45 }
  0x53   :  { %713 = vmatpush.bf16.msra.mxu1 %v1433_v10  ;;  %v1398_v10 = vld [vmem:[#allocation10 + $0x88] sm:$0xf0] }
  0x54   :  { %672 = vmatpush.bf16.msrb.mxu2 %v1357_v55  ;;  %v1401_v11 = vor.u32 %v1701_v8, %v1398_v10  ;;  %v1730_v10 = vld [vmem:[#allocation11 + $0x64] sm:$0xf0] }
  0x55   :  { %686 = vmatpush.bf16.msrb.mxu3 %v1421_v37  ;;  %v1731_v37 = vld [vmem:[#allocation11 + $0x74] sm:$0xf] }
  0x56   :  { %700 = vmatpush.bf16.msra.mxu0 %v1361_v57  ;;  %v1521_v41 = vor.u32 %v1731_v37, %v1518_v38  ;;  %v1494_v37 = vld [vmem:[#allocation11 + $0x48] sm:$0xf0] }
  0x57   :  { %714 = vmatpush.bf16.msra.mxu1 %v1425_v39  ;;  %v1577_v39 = vor.u32 %v1745_v32, %v1574_v33  ;;  %v1492_v33 = vld [vmem:[#allocation11 + $0x40] sm:$0xf] }
  0x58   :  { %673 = vmatpush.bf16.msrb.mxu2 %v1349_v3  ;;  %v1564_v3 = vld [vmem:[#allocation11 + $0xd0] sm:$0xf]  ;;  %v1493_v36 = vor.u32 %v1726_v34, %v1492_v33 }
  0x59   :  { %687 = vmatpush.bf16.msrb.mxu3 %v1413_v49  ;;  %v1565_v6 = vor.u32 %v1744_v4, %v1564_v3  ;;  %v1526_v3 = vld [vmem:[#allocation11 + $0x88] sm:$0xf0] }
  0x5a   :  { %701 = vmatpush.bf16.msra.mxu0 %v1353_v5  ;;  %v1743_v5 = vld [vmem:[#allocation11 + $0xd4] sm:$0xf] }
  0x5b   :  { %715 = vmatpush.bf16.msra.mxu1 %v1417_v51  ;;  %v1569_v8 = vor.u32 %v1743_v5, %v1566_v7  ;;  %v1468_v5 = vld [vmem:[#allocation11 + $0x10] sm:$0xf]  ;;  %v1719_v7 = vld [vmem:[#allocation11 + $0x14] sm:$0xf] }
  0x5d   :  { %688 = vmatpush.bf16.msrb.mxu3 %v1405_v61 }
  0x5f   :  { %716 = vmatpush.bf16.msra.mxu1 %v1409_v63 }
  0x61   :  { %689 = vmatpush.bf16.msrb.mxu3 %v1397_v9  ;;  %v1508_v9 = vld [vmem:[#allocation11 + $0x60] sm:$0xf] }
  0x63   :  { %717 = vmatpush.bf16.msra.mxu1 %v1401_v11  ;;  %v1729_v11 = vld [vmem:[#allocation11 + $0x64] sm:$0xf] }
  0xa2   :  { %v185_v12 = vpop.f32.mrf.mxu0 }
  0xa3   :  { %v199_v13 = vpop.f32.mrf.mxu1  ;;  %v186_v16 = vadd.f32 %v185_v12, %v153_v14  ;;  %v1340_v12 = vld [vmem:[#allocation10 + $0x10] sm:$0xf] }
  0xa4   :  { %v200_v17 = vadd.f32 %v199_v13, %v154_v15  ;;  %v1688_v13 = vld [vmem:[#allocation10 + $0x14] sm:$0xf0] }
  0xa5   :  { %v204_v22 = vmax.f32 %v186_v16, 0.0  ;;  %v1342_v16 = vld [vmem:[#allocation10 + $0x18] sm:$0xf0] }
  0xa6   :  { %v205_v24 = vmax.f32 %v200_v17, 0.0 }
  0xaa   :  { %v187_v18 = vpop.f32.mrf.mxu0 }
  0xab   :  { %v188_v19 = vadd.f32 %v187_v18, %v153_v14  ;;  %v201_v20 = vpop.f32.mrf.mxu1  ;;  %v1687_v14 = vld [vmem:[#allocation10 + $0x14] sm:$0xf]  ;;  %v1332_v18 = vld [vmem:[#allocation10] sm:$0xf] }
  0xac   :  { %v202_v21 = vadd.f32 %v201_v20, %v154_v15  ;;  %v1341_v15 = vor.u32 %v1688_v13, %v1340_v12  ;;  %v1345_v17 = vor.u32 %v1687_v14, %v1342_v16  ;;  %v1685_v20 = vld [vmem:[#allocation10 + $0x4] sm:$0xf]  ;;  %v1509_v12 = vor.u32 %v1730_v10, %v1508_v9  ;;  %v1510_v13 = vld [vmem:[#allocation11 + $0x68] sm:$0xf0]  ;;  %v1556_v14 = vld [vmem:[#allocation11 + $0xc0] sm:$0xf] }
  0xad   :  { %v206_v23 = vmax.f32 %v188_v19, 0.0  ;;  %v1686_v19 = vld [vmem:[#allocation10 + $0x4] sm:$0xf0]  ;;  %v1513_v16 = vor.u32 %v1729_v11, %v1510_v13  ;;  %v1470_v9 = vld [vmem:[#allocation11 + $0x18] sm:$0xf0] }
  0xae   :  { %v207_v25 = vmax.f32 %v202_v21, 0.0  ;;  %674 = vmatpush.bf16.msrb.mxu2 %v1341_v15  ;;  %702 = vmatpush.bf16.msra.mxu0 %v1345_v17  ;;  %v1333_v21 = vor.u32 %v1686_v19, %v1332_v18  ;;  %v1742_v15 = vld [vmem:[#allocation11 + $0xc4] sm:$0xf0]  ;;  %v1741_v18 = vld [vmem:[#allocation11 + $0xc4] sm:$0xf]  ;;  %v1473_v10 = vor.u32 %v1719_v7, %v1470_v9 }
  0xaf   :  { %v208_v26 = vpack.c.bf16 %v206_v23, %v204_v22  ;;  %v1334_v22 = vld [vmem:[#allocation10 + $0x8] sm:$0xf0]  ;;  %v1557_v17 = vor.u32 %v1742_v15, %v1556_v14  ;;  %v1460_v11 = vld [vmem:[#allocation11] sm:$0xf]  ;;  %v1717_v13 = vld [vmem:[#allocation11 + $0x4] sm:$0xf] }
  0xb0   :  { %v209_v27 = vpack.c.bf16 %v207_v25, %v205_v24  ;;  %v1337_v23 = vor.u32 %v1685_v20, %v1334_v22  ;;  %v1580_v24 = vld [vmem:[#allocation11 + $0xf0] sm:$0xf]  ;;  %v1748_v25 = vld [vmem:[#allocation11 + $0xf4] sm:$0xf0]  ;;  %v1558_v19 = vld [vmem:[#allocation11 + $0xc8] sm:$0xf0] }
  0xb1   :  { %416 = vmatmul.bf16.vlgmr.msra.gmra.mxu2 %v208_v26  ;;  %444 = vmatmul.bf16.vlgmr.msrb.gmra.mxu0 %v208_v26  ;;  %v1747_v26 = vld [vmem:[#allocation11 + $0xf4] sm:$0xf]  ;;  %v1561_v20 = vor.u32 %v1741_v18, %v1558_v19  ;;  %v1728_v22 = vld [vmem:[#allocation11 + $0x54] sm:$0xf0]  ;;  %v1462_v15 = vld [vmem:[#allocation11 + $0x8] sm:$0xf0] }
  0xb2   :  { %430 = vmatmul.bf16.vlgmr.msra.gmra.mxu3 %v209_v27  ;;  %458 = vmatmul.bf16.vlgmr.msrb.gmra.mxu1 %v209_v27  ;;  %v1581_v27 = vor.u32 %v1748_v25, %v1580_v24  ;;  %v1585_v31 = vor.u32 %v1747_v26, %v1582_v28  ;;  %v1502_v25 = vld [vmem:[#allocation11 + $0x58] sm:$0xf0]  ;;  %v1740_v28 = vld [vmem:[#allocation11 + $0xb4] sm:$0xf0]  ;;  %v1763_v19 = vld [vmem:[#allocation13 + $0x70] sm:$0xff] }
  0xb3   :  { %675 = vmatpush.bf16.msrb.mxu2 %v1333_v21  ;;  %703 = vmatpush.bf16.msra.mxu0 %v1337_v23  ;;  %v1500_v21 = vld [vmem:[#allocation11 + $0x50] sm:$0xf]  ;;  %v1727_v23 = vld [vmem:[#allocation11 + $0x54] sm:$0xf]  ;;  %v1756_v18 = vld [vmem:[#allocation13 + $0x38] sm:$0xff] }
  0xb4   :  { %942 = vmatpush.bf16.msra.mxu3 %v1581_v27  ;;  %970 = vmatpush.bf16.msrb.mxu1 %v1585_v31  ;;  %v1501_v24 = vor.u32 %v1728_v22, %v1500_v21  ;;  %v1505_v26 = vor.u32 %v1727_v23, %v1502_v25  ;;  %v1548_v27 = vld [vmem:[#allocation11 + $0xb0] sm:$0xf]  ;;  %v1550_v31 = vld [vmem:[#allocation11 + $0xb8] sm:$0xf0] }
  0xb5   :  { %v1549_v29 = vor.u32 %v1740_v28, %v1548_v27  ;;  %v1553_v32 = vor.u32 %v1739_v30, %v1550_v31 }
  0xb7   :  { %928 = vmatpush.bf16.msra.mxu2 %v1517_v40  ;;  %956 = vmatpush.bf16.msrb.mxu0 %v1521_v41  ;;  %v1738_v40 = vld [vmem:[#allocation11 + $0xa4] sm:$0xf0]  ;;  %v1737_v41 = vld [vmem:[#allocation11 + $0xa4] sm:$0xf] }
  0xb8   :  { %943 = vmatpush.bf16.msra.mxu3 %v1573_v35  ;;  %971 = vmatpush.bf16.msrb.mxu1 %v1577_v39  ;;  %v1725_v35 = vld [vmem:[#allocation11 + $0x44] sm:$0xf]  ;;  %v1540_v39 = vld [vmem:[#allocation11 + $0xa0] sm:$0xf] }
  0xb9   :  { %v1497_v38 = vor.u32 %v1725_v35, %v1494_v37  ;;  %v1541_v42 = vor.u32 %v1738_v40, %v1540_v39 }
  0xbb   :  { %929 = vmatpush.bf16.msra.mxu2 %v1509_v12  ;;  %957 = vmatpush.bf16.msrb.mxu0 %v1513_v16  ;;  %v1718_v12 = vld [vmem:[#allocation11 + $0x4] sm:$0xf0]  ;;  %v1465_v16 = vor.u32 %v1717_v13, %v1462_v15 }
  0xbc   :  { %944 = vmatpush.bf16.msra.mxu3 %v1565_v6  ;;  %972 = vmatpush.bf16.msrb.mxu1 %v1569_v8  ;;  %v1720_v6 = vld [vmem:[#allocation11 + $0x14] sm:$0xf0]  ;;  %v1461_v14 = vor.u32 %v1718_v12, %v1460_v11 }
  0xbd   :  { %v1469_v8 = vor.u32 %v1720_v6, %v1468_v5 }
  0xbf   :  { %930 = vmatpush.bf16.msra.mxu2 %v1501_v24  ;;  %958 = vmatpush.bf16.msrb.mxu0 %v1505_v26 }
  0xc0   :  { %945 = vmatpush.bf16.msra.mxu3 %v1557_v17  ;;  %973 = vmatpush.bf16.msrb.mxu1 %v1561_v20  ;;  %v1764_v17 = vld [vmem:[#allocation13 + $0x78] sm:$0xff]  ;;  %v502_v20 = vld [vmem:[%s2130_s6] sm:$0x3] }
  0xc1   :  { %v505_v23 = vperm.slane %v502_v20, 1  ;;  %v504_v27 = vperm.slane %v502_v20, 0 }
  0xc3   :  { %931 = vmatpush.bf16.msra.mxu2 %v1493_v36  ;;  %959 = vmatpush.bf16.msrb.mxu0 %v1497_v38 }
  0xc4   :  { %946 = vmatpush.bf16.msra.mxu3 %v1549_v29  ;;  %974 = vmatpush.bf16.msrb.mxu1 %v1553_v32 }
  0xc8   :  { %947 = vmatpush.bf16.msra.mxu3 %v1541_v42 }
 0x12e   :  { %v445_v43 = vpop.f32.mrf.mxu0 }
 0x12f   :  { %v459_v45 = vpop.f32.mrf.mxu1  ;;  %v446_v46 = vadd.f32 %v445_v43, %v245_v44  ;;  %v1542_v43 = vld [vmem:[#allocation11 + $0xa8] sm:$0xf0] }
 0x131   :  { %v460_v51 = vadd.f32 %v459_v45, %v446_v46  ;;  %v1484_v45 = vld [vmem:[#allocation11 + $0x30] sm:$0xf]  ;;  %v1724_v46 = vld [vmem:[#allocation11 + $0x34] sm:$0xf0] }
 0x133   :  { %v465_v56 = vmax.f32 %v460_v51, 0.0  ;;  %v1532_v51 = vld [vmem:[#allocation11 + $0x90] sm:$0xf] }
 0x134   :  { %v417_v47 = vpop.f32.mrf.mxu2 }
 0x135   :  { %v431_v49 = vpop.f32.mrf.mxu3  ;;  %v418_v54 = vadd.f32 %v417_v47, %v244_v48  ;;  %v1723_v47 = vld [vmem:[#allocation11 + $0x34] sm:$0xf] }
 0x136   :  { %v447_v50 = vpop.f32.mrf.mxu0 }
 0x137   :  { %v448_v52 = vadd.f32 %v447_v50, %v245_v44  ;;  %v461_v53 = vpop.f32.mrf.mxu1  ;;  %v432_v59 = vadd.f32 %v431_v49, %v418_v54  ;;  %v1545_v44 = vor.u32 %v1737_v41, %v1542_v43  ;;  %v1486_v49 = vld [vmem:[#allocation11 + $0x38] sm:$0xf0] }
 0x138   :  { %v1489_v50 = vor.u32 %v1723_v47, %v1486_v49  ;;  %v1761_v47 = vld [vmem:[#allocation13 + $0x60] sm:$0xff]  ;;  %v1760_v49 = vld [vmem:[#allocation13 + $0x58] sm:$0xff] }
 0x139   :  { %v462_v55 = vadd.f32 %v461_v53, %v448_v52  ;;  %v464_v0 = vmax.f32 %v432_v59, 0.0  ;;  %975 = vmatpush.bf16.msrb.mxu1 %v1545_v44  ;;  %v1736_v52 = vld [vmem:[#allocation11 + $0x94] sm:$0xf0]  ;;  %v1735_v53 = vld [vmem:[#allocation11 + $0x94] sm:$0xf] }
 0x13a   :  { %v1533_v54 = vor.u32 %v1736_v52, %v1532_v51  ;;  %960 = vmatpush.bf16.msrb.mxu0 %v1489_v50  ;;  %v1721_v59 = vld [vmem:[#allocation11 + $0x24] sm:$0xf]  ;;  %v1759_v51 = vld [vmem:[#allocation13 + $0x50] sm:$0xff]  ;;  %v1752_v52 = vld [vmem:[#allocation13 + $0x18] sm:$0xff] }
 0x13b   :  { %v467_v57 = vmax.f32 %v462_v55, 0.0  ;;  %v1534_v55 = vld [vmem:[#allocation11 + $0x98] sm:$0xf0]  ;;  %v1753_v50 = vld [vmem:[#allocation13 + $0x20] sm:$0xff] }
 0x13c   :  { %v419_v58 = vpop.f32.mrf.mxu2  ;;  %948 = vmatpush.bf16.msra.mxu3 %v1533_v54  ;;  %v1751_v54 = vld [vmem:[#allocation13 + $0x10] sm:$0xff] }
 0x13d   :  { %v469_v60 = vpack.c.bf16 %v467_v57, %v465_v56  ;;  %v420_v61 = vadd.f32 %v419_v58, %v244_v48  ;;  %v433_v62 = vpop.f32.mrf.mxu3  ;;  %v1485_v48 = vor.u32 %v1724_v46, %v1484_v45  ;;  %v1537_v56 = vor.u32 %v1735_v53, %v1534_v55  ;;  %v1476_v57 = vld [vmem:[#allocation11 + $0x20] sm:$0xf]  ;;  %v1722_v58 = vld [vmem:[#allocation11 + $0x24] sm:$0xf0]  ;;  %v1755_v46 = vld [vmem:[#allocation13 + $0x30] sm:$0xff] }
 0x13e   :  { %v1762_v45 = vld [vmem:[#allocation13 + $0x68] sm:$0xff]  ;;  %v1757_v55 = vld [vmem:[#allocation13 + $0x40] sm:$0xff] }
 0x13f   :  { %v434_v63 = vadd.f32 %v433_v62, %v420_v61  ;;  %690 = vmatmul.bf16.vlgmr.msrb.gmra.mxu3 %v469_v60  ;;  %718 = vmatmul.bf16.vlgmr.msra.gmra.mxu1 %v469_v60  ;;  %v1477_v60 = vor.u32 %v1722_v58, %v1476_v57  ;;  %v1478_v61 = vld [vmem:[#allocation11 + $0x28] sm:$0xf0]  ;;  %v1749_v57 = vld [vmem:[#allocation13] sm:$0xff] }
 0x140   :  { %932 = vmatpush.bf16.msra.mxu2 %v1485_v48  ;;  %976 = vmatpush.bf16.msrb.mxu1 %v1537_v56  ;;  %v1481_v62 = vor.u32 %v1721_v59, %v1478_v61  ;;  %v1754_v48 = vld [vmem:[#allocation13 + $0x28] sm:$0xff]  ;;  %v762_v58 = vld [vmem:[%s2132_s8] sm:$0x3] }
 0x141   :  { %v466_v1 = vmax.f32 %v434_v63, 0.0  ;;  %v1524_v63 = vld [vmem:[#allocation11 + $0x80] sm:$0xf]  ;;  %v1758_v53 = vld [vmem:[#allocation13 + $0x48] sm:$0xff]  ;;  %v765_v61 = vperm.slane %v762_v58, 1 }
 0x142   :  { %961 = vmatpush.bf16.msrb.mxu0 %v1481_v62  ;;  %v1750_v56 = vld [vmem:[#allocation13 + $0x8] sm:$0xff] }
 0x143   :  { %v468_v2 = vpack.c.bf16 %v466_v1, %v464_v0  ;;  %v1734_v0 = vld [vmem:[#allocation11 + $0x84] sm:$0xf0]  ;;  %v1733_v1 = vld [vmem:[#allocation11 + $0x84] sm:$0xf] }
 0x144   :  { %933 = vmatpush.bf16.msra.mxu2 %v1477_v60  ;;  %v1529_v4 = vor.u32 %v1733_v1, %v1526_v3  ;;  %v764_v1 = vperm.slane %v762_v58, 0 }
 0x145   :  { %676 = vmatmul.bf16.vlgmr.msrb.gmra.mxu2 %v468_v2  ;;  %704 = vmatmul.bf16.vlgmr.msra.gmra.mxu0 %v468_v2  ;;  %v1525_v2 = vor.u32 %v1734_v0, %v1524_v63 }
 0x146   :  { %977 = vmatpush.bf16.msrb.mxu1 %v1529_v4  ;;  %962 = vmatpush.bf16.msrb.mxu0 %v1473_v10 }
 0x147   :  { %949 = vmatpush.bf16.msra.mxu3 %v1525_v2 }
 0x148   :  { %934 = vmatpush.bf16.msra.mxu2 %v1469_v8 }
 0x14a   :  { %963 = vmatpush.bf16.msrb.mxu0 %v1465_v16 }
 0x14b   :  { %1136 = vmatpush.bf16.msrb.mxu3 %v1764_v17 }
 0x14c   :  { %935 = vmatpush.bf16.msra.mxu2 %v1461_v14 }
 0x14f   :  { %1137 = vmatpush.bf16.msrb.mxu3 %v1763_v19  ;;  %v1782_v19 = vld [vmem:[%s2134_s10] ss:$0 sm:$0xff]  ;;  %s2004_s10 = smov [#allocation14]  }
 0x150   :  { %1122 = vmatpush.bf16.msrb.mxu2 %v1756_v18  ;;  %s1170_s14 = sshll.u32 %s2004_s10, 4  ;;  %s1171_s14 = int_to_ptr.vmem [resolvable:$true] %s1170_s14 }
 0x153   :  { %1138 = vmatpush.bf16.msrb.mxu3 %v1762_v45 }
 0x154   :  { %1123 = vmatpush.bf16.msrb.mxu2 %v1755_v46 }
 0x157   :  { %1139 = vmatpush.bf16.msrb.mxu3 %v1761_v47 }
 0x158   :  { %1124 = vmatpush.bf16.msrb.mxu2 %v1754_v48 }
 0x15b   :  { %1140 = vmatpush.bf16.msrb.mxu3 %v1760_v49 }
 0x15c   :  { %1125 = vmatpush.bf16.msrb.mxu2 %v1753_v50 }
 0x15f   :  { %1141 = vmatpush.bf16.msrb.mxu3 %v1759_v51 }
 0x160   :  { %1126 = vmatpush.bf16.msrb.mxu2 %v1752_v52 }
 0x163   :  { %1142 = vmatpush.bf16.msrb.mxu3 %v1758_v53 }
 0x164   :  { %1127 = vmatpush.bf16.msrb.mxu2 %v1751_v54 }
 0x167   :  { %1143 = vmatpush.bf16.msrb.mxu3 %v1757_v55 }
 0x168   :  { %1128 = vmatpush.bf16.msrb.mxu2 %v1750_v56 }
 0x16c   :  { %1129 = vmatpush.bf16.msrb.mxu2 %v1749_v57 }
 0x1bc   :  { %v719_v21 = vpop.f32.mrf.mxu1 }
 0x1c2   :  { %v705_v22 = vpop.f32.mrf.mxu0  ;;  %v691_v25 = vpop.f32.mrf.mxu3 }
 0x1c3   :  { %v706_v24 = vadd.f32 %v705_v22, %v505_v23 }
 0x1c4   :  { %v721_v31 = vpop.f32.mrf.mxu1 }
 0x1c5   :  { %v720_v29 = vadd.f32 %v719_v21, %v706_v24 }
 0x1c7   :  { %v725_v34 = vmax.f32 %v720_v29, 0.0 }
 0x1c8   :  { %v677_v26 = vpop.f32.mrf.mxu2 }
 0x1c9   :  { %v678_v32 = vadd.f32 %v677_v26, %v504_v27 }
 0x1ca   :  { %v707_v28 = vpop.f32.mrf.mxu0  ;;  %v693_v40 = vpop.f32.mrf.mxu3 }
 0x1cb   :  { %v708_v30 = vadd.f32 %v707_v28, %v505_v23  ;;  %v692_v37 = vadd.f32 %v691_v25, %v678_v32 }
 0x1cd   :  { %v722_v33 = vadd.f32 %v721_v31, %v708_v30  ;;  %v724_v42 = vmax.f32 %v692_v37, 0.0 }
 0x1cf   :  { %v727_v35 = vmax.f32 %v722_v33, 0.0 }
 0x1d0   :  { %v679_v36 = vpop.f32.mrf.mxu2 }
 0x1d1   :  { %v729_v38 = vpack.c.bf16 %v727_v35, %v725_v34  ;;  %v680_v39 = vadd.f32 %v679_v36, %v504_v27 }
 0x1d3   :  { %v694_v41 = vadd.f32 %v693_v40, %v680_v39  ;;  %950 = vmatmul.bf16.vlgmr.msra.gmra.mxu3 %v729_v38  ;;  %978 = vmatmul.bf16.vlgmr.msrb.gmra.mxu1 %v729_v38 }
 0x1d5   :  { %v726_v43 = vmax.f32 %v694_v41, 0.0 }
 0x1d7   :  { %v728_v44 = vpack.c.bf16 %v726_v43, %v724_v42 }
 0x1d9   :  { %936 = vmatmul.bf16.vlgmr.msra.gmra.mxu2 %v728_v44  ;;  %964 = vmatmul.bf16.vlgmr.msrb.gmra.mxu0 %v728_v44 }
 0x250   :  { %v979_v59 = vpop.f32.mrf.mxu1 }
 0x256   :  { %v965_v60 = vpop.f32.mrf.mxu0  ;;  %v951_v63 = vpop.f32.mrf.mxu3 }
 0x257   :  { %v966_v62 = vadd.f32 %v965_v60, %v765_v61 }
 0x258   :  { %v981_v5 = vpop.f32.mrf.mxu1 }
 0x259   :  { %v980_v3 = vadd.f32 %v979_v59, %v966_v62 }
 0x25b   :  { %v985_v8 = vmax.f32 %v980_v3, 0.0 }
 0x25c   :  { %v937_v0 = vpop.f32.mrf.mxu2 }
 0x25d   :  { %v938_v6 = vadd.f32 %v937_v0, %v764_v1 }
 0x25e   :  { %v967_v2 = vpop.f32.mrf.mxu0  ;;  %v953_v14 = vpop.f32.mrf.mxu3 }
 0x25f   :  { %v968_v4 = vadd.f32 %v967_v2, %v765_v61  ;;  %v952_v11 = vadd.f32 %v951_v63, %v938_v6 }
 0x261   :  { %v982_v7 = vadd.f32 %v981_v5, %v968_v4  ;;  %v984_v16 = vmax.f32 %v952_v11, 0.0 }
 0x263   :  { %v987_v9 = vmax.f32 %v982_v7, 0.0 }
 0x264   :  { %v939_v10 = vpop.f32.mrf.mxu2 }
 0x265   :  { %v989_v12 = vpack.c.bf16 %v987_v9, %v985_v8  ;;  %v940_v13 = vadd.f32 %v939_v10, %v764_v1 }
 0x267   :  { %v954_v15 = vadd.f32 %v953_v14, %v940_v13  ;;  %1144 = vmatmul.bf16.vlgmr.msrb.gmra.mxu3 %v989_v12 }
 0x269   :  { %v986_v17 = vmax.f32 %v954_v15, 0.0 }
 0x26b   :  { %v988_v18 = vpack.c.bf16 %v986_v17, %v984_v16 }
 0x26d   :  { %1130 = vmatmul.bf16.vlgmr.msrb.gmra.mxu2 %v988_v18 }
 0x2ea   :  { %v1145_v20 = vpop.f32.mrf.mxu3 }
 0x2f0   :  { %v1131_v21 = vpop.f32.mrf.mxu2 }
 0x2f1   :  { %v1132_v22 = vadd.f32 %v1782_v19, %v1131_v21 }
 0x2f2   :  { %v1147_v28 = vpop.f32.mrf.mxu3 }
 0x2f3   :  { %v1146_v23 = vadd.f32 %v1145_v20, %v1132_v22 }
 0x2f5   :  { %v1150_v24 = vsub.f32 0.0, %v1146_v23 }
 0x2f7   :  { %v1152_v25 = vmul.f32 1.442695, %v1150_v24 }
 0x2f8   :  { %v1133_v26 = vpop.f32.mrf.mxu2 }
 0x2f9   :  { %v1134_v27 = vadd.f32 %v1782_v19, %v1133_v26  ;;  %1783 = vpow2.f32 %v1152_v25 }
 0x2fb   :  { %v1148_v29 = vadd.f32 %v1147_v28, %v1134_v27 }
 0x2fd   :  { %v1151_v30 = vsub.f32 0.0, %v1148_v29 }
 0x2ff   :  { %v1154_v31 = vmul.f32 1.442695, %v1151_v30  ;;  %v1784_v32 = vpop.eup %1783 }
 0x300   :  { %v1156_v33 = vadd.f32 1.0, %v1784_v32 }
 0x301   :  { %1785 = vpow2.f32 %v1154_v31 }
 0x302   :  { %1787 = vrcp.f32 %v1156_v33 }
 0x307   :  { %v1786_v34 = vpop.eup %1785 }
 0x308   :  { %v1157_v35 = vadd.f32 1.0, %v1786_v34  ;;  %v1788_v36 = vpop.eup %1787 }
 0x309   :  { %v1160_v38 = vmul.f32 2.0, %v1788_v36 }
 0x30a   :  { %1789 = vrcp.f32 %v1157_v35 }
 0x310   :  { %v1790_v37 = vpop.eup %1789 }
 0x311   :  { %v1161_v39 = vmul.f32 2.0, %v1790_v37 }
 0x313   :  { %v1768_v40 = vpack.c.bf16 %v1161_v39, %v1160_v38 }
 0x315   :  { %1769 = vst [vmem:[#allocation14] sm:$0xff] %v1768_v40  }
 0x316   :  { %1178 = dma.vmem_to_hbm [thread:$0]  %s1171_s14, 128, %s1173_s7, [#allocation4], %s1999_s17, %s1999_s17, %s2000_s18  }
 0x317   :  { %1991 = dma.done.wait [#allocation4], 128  }
 0x318   :  { %1992 = vsyncadd [#allocation4], 4294967168 }
 0x319   :  { %1183 = vsyncpa [#allocation3], 1 }
 0x31a   :  { %1184 = vsyncpa [#allocation6], 1 }
 0x31b   :  { %1185 = vsyncpa [#allocation9], 1 }
 0x31c   :  { %1186 = vsyncpa [#allocation12], 1 }
 0x31d   :  { %1187 = vsyncpa [#allocation4], 1 }

</bundles_post_ra>
